<compile_context>
chip_gen: v7x
topology: tpu7x:2x2x1
jax: 0.10.0
libtpu: 0.0.40
codegen_flags: <defaults>
</compile_context>

<pallas_src>
import jax
import jax.numpy as jnp
from jax import lax
from jax.experimental import pallas as pl
from jax.experimental.pallas import tpu as pltpu


def _round_up(x, m):
    return (x + m - 1) // m * m


# --------------------------- parameter packing (XLA) ---------------------------
def _pack_gate_weights(w, H, Hp, K):
    """w: (4H, in_dim) PyTorch layout -> (K, 4*Hp), transposed; each gate's H real
    columns sit at lane offset k*Hp, padded rows/lanes are zero."""
    in_dim = w.shape[1]
    out = jnp.zeros((K, 4 * Hp), jnp.float32)
    for k in range(4):
        out = out.at[:in_dim, k * Hp:k * Hp + H].set(w[k * H:(k + 1) * H, :].T)
    return out


def _pack_gate_bias(b, H, Hp):
    """b: (4H,) -> (1, 4*Hp) with per-gate lane padding (zeros in padded lanes)."""
    out = jnp.zeros((1, 4 * Hp), jnp.float32)
    for k in range(4):
        out = out.at[0, k * Hp:k * Hp + H].set(b[k * H:(k + 1) * H])
    return out


# ------------------------------- fused kernel ----------------------------------
def _make_kernel(num_layers, T, Tc, Bp, K, Hp):
    """Grid axis = layer index (weights streamed per layer). PyTorch gate order
    is i, f, g, o."""
    G = 4 * Hp
    n_chunks = (T + Tc - 1) // Tc
    full_width_seq = (K == Hp)

    def sigmoid(v):                      # exact: one EUP (tanh) push per gate
        return 0.5 * jnp.tanh(0.5 * v) + 0.5

    def kernel(x_ref, wih_ref, whh_ref, b_ref, fcw_ref, fcb_ref,
               out_ref, proj_ref, seq_ref):
        l = pl.program_id(0)

        # Layer 0 reads x; later layers read the hidden sequence the previous
        # layer wrote into seq_ref (scratch persists across grid iterations).
        @pl.when(l == 0)
        def _():
            seq_ref[...] = x_ref[...].astype(jnp.float32)

        bias = b_ref[...]                                   # (1, G) f32

        h = jnp.zeros((Bp, Hp), jnp.float32)
        c = jnp.zeros((Bp, Hp), jnp.float32)

        for ci in range(n_chunks):                          # static chunk loop
            t0 = ci * Tc
            tc = min(Tc, T - t0)                            # static (ragged tail)
            base = t0 * Bp
            rows = tc * Bp

            # Input projection (+ bias) for `tc` timesteps: one bf16 MXU matmul
            # with f32 accumulation, hoisted out of the serial recurrence.
            proj_ref[0:rows, :] = jnp.dot(
                seq_ref[base:base + rows, :].astype(jnp.bfloat16),
                wih_ref[...],
                preferred_element_type=jnp.float32) + bias

            def step(t, carry):
                h, c = carry
                prow = pl.multiple_of(t * Bp, Bp)           # tile-aligned slab
                srow = pl.multiple_of(base + t * Bp, Bp)
                z = proj_ref[pl.ds(prow, Bp), :] + jnp.dot(
                    h.astype(jnp.bfloat16), whh_ref[...],
                    preferred_element_type=jnp.float32)
                # Each gate owns its own 128-lane-aligned block of z.
                i_g = sigmoid(z[:, 0 * Hp:1 * Hp])
                f_g = sigmoid(z[:, 1 * Hp:2 * Hp])
                g_g = jnp.tanh(z[:, 2 * Hp:3 * Hp])
                o_g = sigmoid(z[:, 3 * Hp:4 * Hp])
                c_new = f_g * c + i_g * g_g
                h_new = o_g * jnp.tanh(c_new)
                # Hidden sequence for the next layer; f32 so every store is a
                # full (8,128)-tile-aligned slab (hidden under the dep chain).
                if full_width_seq:
                    seq_ref[pl.ds(srow, Bp), :] = h_new
                else:
                    seq_ref[pl.ds(srow, Bp), 0:Hp] = h_new
                return (h_new, c_new)

            h, c = lax.fori_loop(0, tc, step, (h, c), unroll=min(tc, 8))

        # FC head on the final layer's last hidden state only; lane-dense store.
        @pl.when(l == num_layers - 1)
        def _():
            out_ref[...] = (
                jnp.dot(h.astype(jnp.bfloat16), fcw_ref[...],
                        preferred_element_type=jnp.float32)
                + fcb_ref[...]).astype(out_ref.dtype)

    return kernel


# ------------------------------- forward wrapper -------------------------------
@jax.jit
def lstm_classifier_forward(x, lstm_params, fc_w, fc_b):
    """x: (B, T, inp) batch-first, exactly like the PyTorch module. -> (B, out)."""
    B, T, I = x.shape
    H = lstm_params[0][1].shape[1]          # w_hh: (4H, H)
    O = fc_w.shape[0]
    L = len(lstm_params)

    # TODO(synk): on v6e/v7x at production hidden sizes round Hp to 256 so the
    # h@W_hh contraction fills the 256-deep MXU (128-per-gate is ideal on v5e).
    Hp = _round_up(H, 128)                  # each gate gets a full 128-lane block
    Bp = _round_up(B, 8)                    # full f32 sublane tile per timestep
    Op = _round_up(O, 128)                  # lane-dense final store
    K = max(Hp, _round_up(I, 128))          # common contraction dim, all layers
    G = 4 * Hp

    # Chunk the hoisted input projection so proj scratch stays ~4 MiB even for
    # long sequences (keeps us inside v7x's 64 MiB VMEM at production T).
    Tc = max(1, min(T, (4 * 1024 * 1024) // (Bp * G * 4)))

    # Time-major, batch-padded, flattened, bf16 input: (T*Bp, K).
    xt = jnp.transpose(x, (1, 0, 2)).astype(jnp.float32)          # (T, B, I)
    xp = jnp.zeros((T, Bp, K), jnp.float32).at[:, :B, :I].set(xt)
    xp = xp.reshape(T * Bp, K).astype(jnp.bfloat16)

    # Per-layer weights stacked along a leading layer axis and streamed via the
    # grid, so only ~2 layers' blocks are resident in VMEM at any time.
    wih_l, whh_l, bias_l = [], [], []
    for (w_ih, w_hh, b_ih, b_hh) in lstm_params:
        wih_l.append(_pack_gate_weights(w_ih, H, Hp, K))           # (K, G)
        whh_l.append(_pack_gate_weights(w_hh, H, Hp, Hp))          # (Hp, G)
        bias_l.append(_pack_gate_bias(b_ih + b_hh, H, Hp))         # (1, G)
    wih_s = jnp.stack(wih_l).astype(jnp.bfloat16)                  # (L, K, G)
    whh_s = jnp.stack(whh_l).astype(jnp.bfloat16)                  # (L, Hp, G)
    bias_s = jnp.stack(bias_l)                                     # (L, 1, G) f32

    fcw_p = jnp.zeros((Hp, Op), jnp.float32).at[:H, :O].set(fc_w.T)
    fcw_p = fcw_p.astype(jnp.bfloat16)
    fcb_p = jnp.zeros((1, Op), jnp.float32).at[0, :O].set(fc_b)

    # VMEM budget sized from the actual scratch + (double-buffered) blocks.
    vmem_bytes = (2 * T * Bp * K * 2               # x (conservatively x2)
                  + 2 * K * G * 2                  # W_ih block, double-buffered
                  + 2 * Hp * G * 2                 # W_hh block
                  + 2 * G * 4                      # bias block
                  + 2 * Hp * Op * 2 + 2 * Op * 4   # FC
                  + 2 * Bp * Op * 4                # output block
                  + Tc * Bp * G * 4                # proj scratch
                  + T * Bp * K * 4)                # inter-layer hidden sequence
    vmem_limit = int(min(128 * 1024 * 1024,
                         max(32 * 1024 * 1024, 2 * vmem_bytes + (1 << 20))))

    out = pl.pallas_call(
        _make_kernel(L, T, Tc, Bp, K, Hp),
        out_shape=jax.ShapeDtypeStruct((Bp, Op), jnp.float32),
        grid_spec=pltpu.PrefetchScalarGridSpec(
            num_scalar_prefetch=0,
            grid=(L,),                                           # layer streaming
            in_specs=[
                pl.BlockSpec((T * Bp, K), lambda l: (0, 0)),        # x (resident)
                pl.BlockSpec((None, K, G), lambda l: (l, 0, 0)),    # W_ih[l]
                pl.BlockSpec((None, Hp, G), lambda l: (l, 0, 0)),   # W_hh[l]
                pl.BlockSpec((None, 1, G), lambda l: (l, 0, 0)),    # bias[l]
                pl.BlockSpec((Hp, Op), lambda l: (0, 0)),           # FC W (resident)
                pl.BlockSpec((1, Op), lambda l: (0, 0)),            # FC b (resident)
            ],
            out_specs=pl.BlockSpec((Bp, Op), lambda l: (0, 0)),
            scratch_shapes=[
                pltpu.VMEM((Tc * Bp, G), jnp.float32),   # chunked input projection
                pltpu.VMEM((T * Bp, K), jnp.float32),    # inter-layer hidden seq
            ]),
        compiler_params=pltpu.CompilerParams(
            dimension_semantics=("arbitrary",),          # layer l+1 depends on l
            vmem_limit_bytes=vmem_limit),
    )(xp, wih_s, whh_s, bias_s, fcw_p, fcb_p)
    return out[:B, :O].astype(x.dtype)


# ----------------------------- Pure-JAX reference ------------------------------
def reference_forward(x, lstm_params, fc_w, fc_b):
    out = x
    for (w_ih, w_hh, b_ih, b_hh) in lstm_params:
        H = w_hh.shape[1]
        B = out.shape[0]

        def step(carry, x_t):
            h, c = carry
            z = x_t @ w_ih.T + b_ih + h @ w_hh.T + b_hh
            i = jax.nn.sigmoid(z[:, :H])
            f = jax.nn.sigmoid(z[:, H:2 * H])
            g = jnp.tanh(z[:, 2 * H:3 * H])
            o = jax.nn.sigmoid(z[:, 3 * H:4 * H])
            c = f * c + i * g
            h = o * jnp.tanh(c)
            return (h, c), h

        init = (jnp.zeros((B, H), jnp.float32), jnp.zeros((B, H), jnp.float32))
        _, hs = jax.lax.scan(step, init, jnp.transpose(out, (1, 0, 2)))
        out = jnp.transpose(hs, (1, 0, 2))
    return out[:, -1, :] @ fc_w.T + fc_b


# ---------------------------------- Main ---------------------------------------
if __name__ == "__main__":
    # Small shapes consistent with the module: nn.LSTM(inp, hid, layers), Linear(hid, out)
    B, T, INP, HID, LAYERS, OUT = 2, 8, 16, 32, 2, 4

    key = jax.random.PRNGKey(0)
    keys = jax.random.split(key, 1 + 4 * LAYERS + 2)

    scale = 1.0 / jnp.sqrt(HID)
    lstm_params = []
    kidx = 1
    for layer in range(LAYERS):
        in_size = INP if layer == 0 else HID
        w_ih = jax.random.uniform(keys[kidx + 0], (4 * HID, in_size),
                                  minval=-scale, maxval=scale, dtype=jnp.float32)
        w_hh = jax.random.uniform(keys[kidx + 1], (4 * HID, HID),
                                  minval=-scale, maxval=scale, dtype=jnp.float32)
        b_ih = jax.random.uniform(keys[kidx + 2], (4 * HID,),
                                  minval=-scale, maxval=scale, dtype=jnp.float32)
        b_hh = jax.random.uniform(keys[kidx + 3], (4 * HID,),
                                  minval=-scale, maxval=scale, dtype=jnp.float32)
        lstm_params.append((w_ih, w_hh, b_ih, b_hh))
        kidx += 4
    fc_w = jax.random.uniform(keys[kidx + 0], (OUT, HID),
                              minval=-scale, maxval=scale, dtype=jnp.float32)
    fc_b = jax.random.uniform(keys[kidx + 1], (OUT,),
                              minval=-scale, maxval=scale, dtype=jnp.float32)

    x = jax.random.normal(keys[0], (B, T, INP), dtype=jnp.float32)

    y = lstm_classifier_forward(x, tuple(lstm_params), fc_w, fc_b)
    y = jax.block_until_ready(y)

    y_ref = reference_forward(x, lstm_params, fc_w, fc_b)
    assert y.shape == (B, OUT)
    # bf16 weights/inputs on the MXU path (f32 accumulation / gate math) ->
    # bf16-appropriate tolerance vs. the pure-f32 reference.
    assert jnp.allclose(y, y_ref, atol=2e-2, rtol=2e-2), (y, y_ref)

    print("KERNEL_OK")
</pallas_src>

<mosaic_0001>
module attributes {stable_mosaic.version = 11 : i64} {
  func.func @kernel(%arg0: i32, %arg1: memref<64x128xbf16, #tpu.memory_space<vmem>>, %arg2: memref<1x128x512xbf16, #tpu.memory_space<vmem>>, %arg3: memref<1x128x512xbf16, #tpu.memory_space<vmem>>, %arg4: memref<1x1x512xf32, #tpu.memory_space<vmem>>, %arg5: memref<128x128xbf16, #tpu.memory_space<vmem>>, %arg6: memref<1x128xf32, #tpu.memory_space<vmem>>, %arg7: memref<8x128xf32, #tpu.memory_space<vmem>>, %arg8: memref<64x512xf32, #tpu.memory_space<vmem>>, %arg9: memref<64x128xf32, #tpu.memory_space<vmem>>) attributes {dimension_semantics = [#tpu.dimension_semantics<arbitrary>], iteration_bounds = array<i64: 2>, scalar_prefetch = 0 : i64, scratch_operands = 2 : i64, tpu.core_type = #tpu.core_type<tc>, window_params = [{pipeline_mode = #tpu.pipeline_mode<synchronous>, transform_indices = @transform_0, window_bounds = array<i64: 64, 128>}, {transform_indices = @transform_1, window_bounds = array<i64: 1, 128, 512>}, {transform_indices = @transform_2, window_bounds = array<i64: 1, 128, 512>}, {transform_indices = @transform_3, window_bounds = array<i64: 1, 1, 512>}, {pipeline_mode = #tpu.pipeline_mode<synchronous>, transform_indices = @transform_4, window_bounds = array<i64: 128, 128>}, {pipeline_mode = #tpu.pipeline_mode<synchronous>, transform_indices = @transform_5, window_bounds = array<i64: 1, 128>}, {pipeline_mode = #tpu.pipeline_mode<synchronous>, transform_indices = @transform_6, window_bounds = array<i64: 8, 128>}]} {
    %c0_i32 = arith.constant 0 : i32
    %0 = arith.cmpi eq, %arg0, %c0_i32 : i32
    %1 = arith.extui %0 : i1 to i32
    %c0_i32_0 = arith.constant 0 : i32
    %2 = arith.cmpi ne, %1, %c0_i32_0 : i32
    scf.if %2 {
      %c0_159 = arith.constant 0 : index
      %c0_160 = arith.constant 0 : index
      %378 = vector.load %arg1[%c0_159, %c0_160] : memref<64x128xbf16, #tpu.memory_space<vmem>>, vector<64x128xbf16>
      %379 = arith.extf %378 : vector<64x128xbf16> to vector<64x128xf32>
      %c0_161 = arith.constant 0 : index
      %c0_162 = arith.constant 0 : index
      %380 = vector.load %arg9[%c0_161, %c0_162] : memref<64x128xf32, #tpu.memory_space<vmem>>, vector<64x128xf32>
      tpu.vector_store %arg9[%c0_161, %c0_162], %379 {strides = array<i32>} : memref<64x128xf32, #tpu.memory_space<vmem>>, vector<64x128xf32>,
    } else {
    }
    %c0 = arith.constant 0 : index
    %c0_1 = arith.constant 0 : index
    %c0_2 = arith.constant 0 : index
    %3 = vector.load %arg4[%c0, %c0_1, %c0_2] : memref<1x1x512xf32, #tpu.memory_space<vmem>>, vector<1x1x512xf32>
    %4 = vector.shape_cast %3 : vector<1x1x512xf32> to vector<1x512xf32>
    %cst = arith.constant 0.000000e+00 : f32
    %5 = vector.broadcast %cst : f32 to vector<8x128xf32>
    %cst_3 = arith.constant 0.000000e+00 : f32
    %6 = vector.broadcast %cst_3 : f32 to vector<8x128xf32>
    %c0_4 = arith.constant 0 : index
    %c0_5 = arith.constant 0 : index
    %7 = vector.load %arg9[%c0_4, %c0_5] : memref<64x128xf32, #tpu.memory_space<vmem>>, vector<64x128xf32>
    %8 = arith.truncf %7 : vector<64x128xf32> to vector<64x128xbf16>
    %c0_6 = arith.constant 0 : index
    %c0_7 = arith.constant 0 : index
    %c0_8 = arith.constant 0 : index
    %9 = vector.load %arg2[%c0_6, %c0_7, %c0_8] : memref<1x128x512xbf16, #tpu.memory_space<vmem>>, vector<1x128x512xbf16>
    %10 = vector.shape_cast %9 : vector<1x128x512xbf16> to vector<128x512xbf16>
    %cst_9 = arith.constant dense<0.000000e+00> : vector<64x512xf32>
    %11 = tpu.matmul %8, %10, %cst_9 {dimension_numbers = #tpu.dot_dimension_numbers<[1], [0], [0], [1], [0, 0, 1, 1], [], []>} : vector<64x128xbf16>, vector<128x512xbf16>, vector<64x512xf32> -> vector<64x512xf32>
    %12 = vector.broadcast %4 : vector<1x512xf32> to vector<64x512xf32>
    %13 = arith.addf %11, %12 : vector<64x512xf32>
    %c0_10 = arith.constant 0 : index
    %c0_11 = arith.constant 0 : index
    %14 = vector.load %arg8[%c0_10, %c0_11] : memref<64x512xf32, #tpu.memory_space<vmem>>, vector<64x512xf32>
    tpu.vector_store %arg8[%c0_10, %c0_11], %13 {strides = array<i32>} : memref<64x512xf32, #tpu.memory_space<vmem>>, vector<64x512xf32>,
    %c0_i32_12 = arith.constant 0 : i32
    %c8_i32 = arith.constant 8 : i32
    %15 = arith.muli %c0_i32_12, %c8_i32 : i32
    %16 = tpu.assume_multiple %15, 8 : i32
    %c8_i32_13 = arith.constant 8 : i32
    %17 = arith.muli %c0_i32_12, %c8_i32_13 : i32
    %c0_i32_14 = arith.constant 0 : i32
    %18 = arith.addi %c0_i32_14, %17 : i32
    %19 = tpu.assume_multiple %18, 8 : i32
    %20 = arith.index_cast %16 : i32 to index
    %c0_15 = arith.constant 0 : index
    %21 = vector.load %arg8[%20, %c0_15] : memref<64x512xf32, #tpu.memory_space<vmem>>, vector<8x512xf32>
    %22 = arith.truncf %5 : vector<8x128xf32> to vector<8x128xbf16>
    %c0_16 = arith.constant 0 : index
    %c0_17 = arith.constant 0 : index
    %c0_18 = arith.constant 0 : index
    %23 = vector.load %arg3[%c0_16, %c0_17, %c0_18] : memref<1x128x512xbf16, #tpu.memory_space<vmem>>, vector<1x128x512xbf16>
    %24 = vector.shape_cast %23 : vector<1x128x512xbf16> to vector<128x512xbf16>
    %cst_19 = arith.constant dense<0.000000e+00> : vector<8x512xf32>
    %25 = tpu.matmul %22, %24, %cst_19 {dimension_numbers = #tpu.dot_dimension_numbers<[1], [0], [0], [1], [0, 0, 1, 1], [], []>} : vector<8x128xbf16>, vector<128x512xbf16>, vector<8x512xf32> -> vector<8x512xf32>
    %26 = arith.addf %21, %25 : vector<8x512xf32>
    %27 = vector.extract_strided_slice %26 {offsets = [0, 0], sizes = [8, 128], strides = [1, 1]} : vector<8x512xf32> to vector<8x128xf32>
    %cst_20 = arith.constant 5.000000e-01 : f32
    %28 = vector.broadcast %cst_20 : f32 to vector<8x128xf32>
    %29 = arith.mulf %28, %27 : vector<8x128xf32>
    %30 = math.tanh %29 : vector<8x128xf32>
    %cst_21 = arith.constant 5.000000e-01 : f32
    %31 = vector.broadcast %cst_21 : f32 to vector<8x128xf32>
    %32 = arith.mulf %31, %30 : vector<8x128xf32>
    %cst_22 = arith.constant 5.000000e-01 : f32
    %33 = vector.broadcast %cst_22 : f32 to vector<8x128xf32>
    %34 = arith.addf %32, %33 : vector<8x128xf32>
    %35 = vector.extract_strided_slice %26 {offsets = [0, 128], sizes = [8, 128], strides = [1, 1]} : vector<8x512xf32> to vector<8x128xf32>
    %cst_23 = arith.constant 5.000000e-01 : f32
    %36 = vector.broadcast %cst_23 : f32 to vector<8x128xf32>
    %37 = arith.mulf %36, %35 : vector<8x128xf32>
    %38 = math.tanh %37 : vector<8x128xf32>
    %cst_24 = arith.constant 5.000000e-01 : f32
    %39 = vector.broadcast %cst_24 : f32 to vector<8x128xf32>
    %40 = arith.mulf %39, %38 : vector<8x128xf32>
    %cst_25 = arith.constant 5.000000e-01 : f32
    %41 = vector.broadcast %cst_25 : f32 to vector<8x128xf32>
    %42 = arith.addf %40, %41 : vector<8x128xf32>
    %43 = vector.extract_strided_slice %26 {offsets = [0, 256], sizes = [8, 128], strides = [1, 1]} : vector<8x512xf32> to vector<8x128xf32>
    %44 = math.tanh %43 : vector<8x128xf32>
    %45 = vector.extract_strided_slice %26 {offsets = [0, 384], sizes = [8, 128], strides = [1, 1]} : vector<8x512xf32> to vector<8x128xf32>
    %cst_26 = arith.constant 5.000000e-01 : f32
    %46 = vector.broadcast %cst_26 : f32 to vector<8x128xf32>
    %47 = arith.mulf %46, %45 : vector<8x128xf32>
    %48 = math.tanh %47 : vector<8x128xf32>
    %cst_27 = arith.constant 5.000000e-01 : f32
    %49 = vector.broadcast %cst_27 : f32 to vector<8x128xf32>
    %50 = arith.mulf %49, %48 : vector<8x128xf32>
    %cst_28 = arith.constant 5.000000e-01 : f32
    %51 = vector.broadcast %cst_28 : f32 to vector<8x128xf32>
    %52 = arith.addf %50, %51 : vector<8x128xf32>
    %53 = arith.mulf %42, %6 : vector<8x128xf32>
    %54 = arith.mulf %34, %44 : vector<8x128xf32>
    %55 = arith.addf %53, %54 : vector<8x128xf32>
    %56 = math.tanh %55 : vector<8x128xf32>
    %57 = arith.mulf %52, %56 : vector<8x128xf32>
    %58 = arith.index_cast %19 : i32 to index
    %c0_29 = arith.constant 0 : index
    %59 = vector.load %arg9[%58, %c0_29] : memref<64x128xf32, #tpu.memory_space<vmem>>, vector<8x128xf32>
    tpu.vector_store %arg9[%58, %c0_29], %57 {strides = array<i32>} : memref<64x128xf32, #tpu.memory_space<vmem>>, vector<8x128xf32>,
    %c1_i32 = arith.constant 1 : i32
    %c8_i32_30 = arith.constant 8 : i32
    %60 = arith.muli %c1_i32, %c8_i32_30 : i32
    %61 = tpu.assume_multiple %60, 8 : i32
    %c8_i32_31 = arith.constant 8 : i32
    %62 = arith.muli %c1_i32, %c8_i32_31 : i32
    %c0_i32_32 = arith.constant 0 : i32
    %63 = arith.addi %c0_i32_32, %62 : i32
    %64 = tpu.assume_multiple %63, 8 : i32
    %65 = arith.index_cast %61 : i32 to index
    %c0_33 = arith.constant 0 : index
    %66 = vector.load %arg8[%65, %c0_33] : memref<64x512xf32, #tpu.memory_space<vmem>>, vector<8x512xf32>
    %67 = arith.truncf %57 : vector<8x128xf32> to vector<8x128xbf16>
    %c0_34 = arith.constant 0 : index
    %c0_35 = arith.constant 0 : index
    %c0_36 = arith.constant 0 : index
    %68 = vector.load %arg3[%c0_34, %c0_35, %c0_36] : memref<1x128x512xbf16, #tpu.memory_space<vmem>>, vector<1x128x512xbf16>
    %69 = vector.shape_cast %68 : vector<1x128x512xbf16> to vector<128x512xbf16>
    %cst_37 = arith.constant dense<0.000000e+00> : vector<8x512xf32>
    %70 = tpu.matmul %67, %69, %cst_37 {dimension_numbers = #tpu.dot_dimension_numbers<[1], [0], [0], [1], [0, 0, 1, 1], [], []>} : vector<8x128xbf16>, vector<128x512xbf16>, vector<8x512xf32> -> vector<8x512xf32>
    %71 = arith.addf %66, %70 : vector<8x512xf32>
    %72 = vector.extract_strided_slice %71 {offsets = [0, 0], sizes = [8, 128], strides = [1, 1]} : vector<8x512xf32> to vector<8x128xf32>
    %cst_38 = arith.constant 5.000000e-01 : f32
    %73 = vector.broadcast %cst_38 : f32 to vector<8x128xf32>
    %74 = arith.mulf %73, %72 : vector<8x128xf32>
    %75 = math.tanh %74 : vector<8x128xf32>
    %cst_39 = arith.constant 5.000000e-01 : f32
    %76 = vector.broadcast %cst_39 : f32 to vector<8x128xf32>
    %77 = arith.mulf %76, %75 : vector<8x128xf32>
    %cst_40 = arith.constant 5.000000e-01 : f32
    %78 = vector.broadcast %cst_40 : f32 to vector<8x128xf32>
    %79 = arith.addf %77, %78 : vector<8x128xf32>
    %80 = vector.extract_strided_slice %71 {offsets = [0, 128], sizes = [8, 128], strides = [1, 1]} : vector<8x512xf32> to vector<8x128xf32>
    %cst_41 = arith.constant 5.000000e-01 : f32
    %81 = vector.broadcast %cst_41 : f32 to vector<8x128xf32>
    %82 = arith.mulf %81, %80 : vector<8x128xf32>
    %83 = math.tanh %82 : vector<8x128xf32>
    %cst_42 = arith.constant 5.000000e-01 : f32
    %84 = vector.broadcast %cst_42 : f32 to vector<8x128xf32>
    %85 = arith.mulf %84, %83 : vector<8x128xf32>
    %cst_43 = arith.constant 5.000000e-01 : f32
    %86 = vector.broadcast %cst_43 : f32 to vector<8x128xf32>
    %87 = arith.addf %85, %86 : vector<8x128xf32>
    %88 = vector.extract_strided_slice %71 {offsets = [0, 256], sizes = [8, 128], strides = [1, 1]} : vector<8x512xf32> to vector<8x128xf32>
    %89 = math.tanh %88 : vector<8x128xf32>
    %90 = vector.extract_strided_slice %71 {offsets = [0, 384], sizes = [8, 128], strides = [1, 1]} : vector<8x512xf32> to vector<8x128xf32>
    %cst_44 = arith.constant 5.000000e-01 : f32
    %91 = vector.broadcast %cst_44 : f32 to vector<8x128xf32>
    %92 = arith.mulf %91, %90 : vector<8x128xf32>
    %93 = math.tanh %92 : vector<8x128xf32>
    %cst_45 = arith.constant 5.000000e-01 : f32
    %94 = vector.broadcast %cst_45 : f32 to vector<8x128xf32>
    %95 = arith.mulf %94, %93 : vector<8x128xf32>
    %cst_46 = arith.constant 5.000000e-01 : f32
    %96 = vector.broadcast %cst_46 : f32 to vector<8x128xf32>
    %97 = arith.addf %95, %96 : vector<8x128xf32>
    %98 = arith.mulf %87, %55 : vector<8x128xf32>
    %99 = arith.mulf %79, %89 : vector<8x128xf32>
    %100 = arith.addf %98, %99 : vector<8x128xf32>
    %101 = math.tanh %100 : vector<8x128xf32>
    %102 = arith.mulf %97, %101 : vector<8x128xf32>
    %103 = arith.index_cast %64 : i32 to index
    %c0_47 = arith.constant 0 : index
    %104 = vector.load %arg9[%103, %c0_47] : memref<64x128xf32, #tpu.memory_space<vmem>>, vector<8x128xf32>
    tpu.vector_store %arg9[%103, %c0_47], %102 {strides = array<i32>} : memref<64x128xf32, #tpu.memory_space<vmem>>, vector<8x128xf32>,
    %c2_i32 = arith.constant 2 : i32
    %c8_i32_48 = arith.constant 8 : i32
    %105 = arith.muli %c2_i32, %c8_i32_48 : i32
    %106 = tpu.assume_multiple %105, 8 : i32
    %c8_i32_49 = arith.constant 8 : i32
    %107 = arith.muli %c2_i32, %c8_i32_49 : i32
    %c0_i32_50 = arith.constant 0 : i32
    %108 = arith.addi %c0_i32_50, %107 : i32
    %109 = tpu.assume_multiple %108, 8 : i32
    %110 = arith.index_cast %106 : i32 to index
    %c0_51 = arith.constant 0 : index
    %111 = vector.load %arg8[%110, %c0_51] : memref<64x512xf32, #tpu.memory_space<vmem>>, vector<8x512xf32>
    %112 = arith.truncf %102 : vector<8x128xf32> to vector<8x128xbf16>
    %c0_52 = arith.constant 0 : index
    %c0_53 = arith.constant 0 : index
    %c0_54 = arith.constant 0 : index
    %113 = vector.load %arg3[%c0_52, %c0_53, %c0_54] : memref<1x128x512xbf16, #tpu.memory_space<vmem>>, vector<1x128x512xbf16>
    %114 = vector.shape_cast %113 : vector<1x128x512xbf16> to vector<128x512xbf16>
    %cst_55 = arith.constant dense<0.000000e+00> : vector<8x512xf32>
    %115 = tpu.matmul %112, %114, %cst_55 {dimension_numbers = #tpu.dot_dimension_numbers<[1], [0], [0], [1], [0, 0, 1, 1], [], []>} : vector<8x128xbf16>, vector<128x512xbf16>, vector<8x512xf32> -> vector<8x512xf32>
    %116 = arith.addf %111, %115 : vector<8x512xf32>
    %117 = vector.extract_strided_slice %116 {offsets = [0, 0], sizes = [8, 128], strides = [1, 1]} : vector<8x512xf32> to vector<8x128xf32>
    %cst_56 = arith.constant 5.000000e-01 : f32
    %118 = vector.broadcast %cst_56 : f32 to vector<8x128xf32>
    %119 = arith.mulf %118, %117 : vector<8x128xf32>
    %120 = math.tanh %119 : vector<8x128xf32>
    %cst_57 = arith.constant 5.000000e-01 : f32
    %121 = vector.broadcast %cst_57 : f32 to vector<8x128xf32>
    %122 = arith.mulf %121, %120 : vector<8x128xf32>
    %cst_58 = arith.constant 5.000000e-01 : f32
    %123 = vector.broadcast %cst_58 : f32 to vector<8x128xf32>
    %124 = arith.addf %122, %123 : vector<8x128xf32>
    %125 = vector.extract_strided_slice %116 {offsets = [0, 128], sizes = [8, 128], strides = [1, 1]} : vector<8x512xf32> to vector<8x128xf32>
    %cst_59 = arith.constant 5.000000e-01 : f32
    %126 = vector.broadcast %cst_59 : f32 to vector<8x128xf32>
    %127 = arith.mulf %126, %125 : vector<8x128xf32>
    %128 = math.tanh %127 : vector<8x128xf32>
    %cst_60 = arith.constant 5.000000e-01 : f32
    %129 = vector.broadcast %cst_60 : f32 to vector<8x128xf32>
    %130 = arith.mulf %129, %128 : vector<8x128xf32>
    %cst_61 = arith.constant 5.000000e-01 : f32
    %131 = vector.broadcast %cst_61 : f32 to vector<8x128xf32>
    %132 = arith.addf %130, %131 : vector<8x128xf32>
    %133 = vector.extract_strided_slice %116 {offsets = [0, 256], sizes = [8, 128], strides = [1, 1]} : vector<8x512xf32> to vector<8x128xf32>
    %134 = math.tanh %133 : vector<8x128xf32>
    %135 = vector.extract_strided_slice %116 {offsets = [0, 384], sizes = [8, 128], strides = [1, 1]} : vector<8x512xf32> to vector<8x128xf32>
    %cst_62 = arith.constant 5.000000e-01 : f32
    %136 = vector.broadcast %cst_62 : f32 to vector<8x128xf32>
    %137 = arith.mulf %136, %135 : vector<8x128xf32>
    %138 = math.tanh %137 : vector<8x128xf32>
    %cst_63 = arith.constant 5.000000e-01 : f32
    %139 = vector.broadcast %cst_63 : f32 to vector<8x128xf32>
    %140 = arith.mulf %139, %138 : vector<8x128xf32>
    %cst_64 = arith.constant 5.000000e-01 : f32
    %141 = vector.broadcast %cst_64 : f32 to vector<8x128xf32>
    %142 = arith.addf %140, %141 : vector<8x128xf32>
    %143 = arith.mulf %132, %100 : vector<8x128xf32>
    %144 = arith.mulf %124, %134 : vector<8x128xf32>
    %145 = arith.addf %143, %144 : vector<8x128xf32>
    %146 = math.tanh %145 : vector<8x128xf32>
    %147 = arith.mulf %142, %146 : vector<8x128xf32>
    %148 = arith.index_cast %109 : i32 to index
    %c0_65 = arith.constant 0 : index
    %149 = vector.load %arg9[%148, %c0_65] : memref<64x128xf32, #tpu.memory_space<vmem>>, vector<8x128xf32>
    tpu.vector_store %arg9[%148, %c0_65], %147 {strides = array<i32>} : memref<64x128xf32, #tpu.memory_space<vmem>>, vector<8x128xf32>,
    %c3_i32 = arith.constant 3 : i32
    %c8_i32_66 = arith.constant 8 : i32
    %150 = arith.muli %c3_i32, %c8_i32_66 : i32
    %151 = tpu.assume_multiple %150, 8 : i32
    %c8_i32_67 = arith.constant 8 : i32
    %152 = arith.muli %c3_i32, %c8_i32_67 : i32
    %c0_i32_68 = arith.constant 0 : i32
    %153 = arith.addi %c0_i32_68, %152 : i32
    %154 = tpu.assume_multiple %153, 8 : i32
    %155 = arith.index_cast %151 : i32 to index
    %c0_69 = arith.constant 0 : index
    %156 = vector.load %arg8[%155, %c0_69] : memref<64x512xf32, #tpu.memory_space<vmem>>, vector<8x512xf32>
    %157 = arith.truncf %147 : vector<8x128xf32> to vector<8x128xbf16>
    %c0_70 = arith.constant 0 : index
    %c0_71 = arith.constant 0 : index
    %c0_72 = arith.constant 0 : index
    %158 = vector.load %arg3[%c0_70, %c0_71, %c0_72] : memref<1x128x512xbf16, #tpu.memory_space<vmem>>, vector<1x128x512xbf16>
    %159 = vector.shape_cast %158 : vector<1x128x512xbf16> to vector<128x512xbf16>
    %cst_73 = arith.constant dense<0.000000e+00> : vector<8x512xf32>
    %160 = tpu.matmul %157, %159, %cst_73 {dimension_numbers = #tpu.dot_dimension_numbers<[1], [0], [0], [1], [0, 0, 1, 1], [], []>} : vector<8x128xbf16>, vector<128x512xbf16>, vector<8x512xf32> -> vector<8x512xf32>
    %161 = arith.addf %156, %160 : vector<8x512xf32>
    %162 = vector.extract_strided_slice %161 {offsets = [0, 0], sizes = [8, 128], strides = [1, 1]} : vector<8x512xf32> to vector<8x128xf32>
    %cst_74 = arith.constant 5.000000e-01 : f32
    %163 = vector.broadcast %cst_74 : f32 to vector<8x128xf32>
    %164 = arith.mulf %163, %162 : vector<8x128xf32>
    %165 = math.tanh %164 : vector<8x128xf32>
    %cst_75 = arith.constant 5.000000e-01 : f32
    %166 = vector.broadcast %cst_75 : f32 to vector<8x128xf32>
    %167 = arith.mulf %166, %165 : vector<8x128xf32>
    %cst_76 = arith.constant 5.000000e-01 : f32
    %168 = vector.broadcast %cst_76 : f32 to vector<8x128xf32>
    %169 = arith.addf %167, %168 : vector<8x128xf32>
    %170 = vector.extract_strided_slice %161 {offsets = [0, 128], sizes = [8, 128], strides = [1, 1]} : vector<8x512xf32> to vector<8x128xf32>
    %cst_77 = arith.constant 5.000000e-01 : f32
    %171 = vector.broadcast %cst_77 : f32 to vector<8x128xf32>
    %172 = arith.mulf %171, %170 : vector<8x128xf32>
    %173 = math.tanh %172 : vector<8x128xf32>
    %cst_78 = arith.constant 5.000000e-01 : f32
    %174 = vector.broadcast %cst_78 : f32 to vector<8x128xf32>
    %175 = arith.mulf %174, %173 : vector<8x128xf32>
    %cst_79 = arith.constant 5.000000e-01 : f32
    %176 = vector.broadcast %cst_79 : f32 to vector<8x128xf32>
    %177 = arith.addf %175, %176 : vector<8x128xf32>
    %178 = vector.extract_strided_slice %161 {offsets = [0, 256], sizes = [8, 128], strides = [1, 1]} : vector<8x512xf32> to vector<8x128xf32>
    %179 = math.tanh %178 : vector<8x128xf32>
    %180 = vector.extract_strided_slice %161 {offsets = [0, 384], sizes = [8, 128], strides = [1, 1]} : vector<8x512xf32> to vector<8x128xf32>
    %cst_80 = arith.constant 5.000000e-01 : f32
    %181 = vector.broadcast %cst_80 : f32 to vector<8x128xf32>
    %182 = arith.mulf %181, %180 : vector<8x128xf32>
    %183 = math.tanh %182 : vector<8x128xf32>
    %cst_81 = arith.constant 5.000000e-01 : f32
    %184 = vector.broadcast %cst_81 : f32 to vector<8x128xf32>
    %185 = arith.mulf %184, %183 : vector<8x128xf32>
    %cst_82 = arith.constant 5.000000e-01 : f32
    %186 = vector.broadcast %cst_82 : f32 to vector<8x128xf32>
    %187 = arith.addf %185, %186 : vector<8x128xf32>
    %188 = arith.mulf %177, %145 : vector<8x128xf32>
    %189 = arith.mulf %169, %179 : vector<8x128xf32>
    %190 = arith.addf %188, %189 : vector<8x128xf32>
    %191 = math.tanh %190 : vector<8x128xf32>
    %192 = arith.mulf %187, %191 : vector<8x128xf32>
    %193 = arith.index_cast %154 : i32 to index
    %c0_83 = arith.constant 0 : index
    %194 = vector.load %arg9[%193, %c0_83] : memref<64x128xf32, #tpu.memory_space<vmem>>, vector<8x128xf32>
    tpu.vector_store %arg9[%193, %c0_83], %192 {strides = array<i32>} : memref<64x128xf32, #tpu.memory_space<vmem>>, vector<8x128xf32>,
    %c4_i32 = arith.constant 4 : i32
    %c8_i32_84 = arith.constant 8 : i32
    %195 = arith.muli %c4_i32, %c8_i32_84 : i32
    %196 = tpu.assume_multiple %195, 8 : i32
    %c8_i32_85 = arith.constant 8 : i32
    %197 = arith.muli %c4_i32, %c8_i32_85 : i32
    %c0_i32_86 = arith.constant 0 : i32
    %198 = arith.addi %c0_i32_86, %197 : i32
    %199 = tpu.assume_multiple %198, 8 : i32
    %200 = arith.index_cast %196 : i32 to index
    %c0_87 = arith.constant 0 : index
    %201 = vector.load %arg8[%200, %c0_87] : memref<64x512xf32, #tpu.memory_space<vmem>>, vector<8x512xf32>
    %202 = arith.truncf %192 : vector<8x128xf32> to vector<8x128xbf16>
    %c0_88 = arith.constant 0 : index
    %c0_89 = arith.constant 0 : index
    %c0_90 = arith.constant 0 : index
    %203 = vector.load %arg3[%c0_88, %c0_89, %c0_90] : memref<1x128x512xbf16, #tpu.memory_space<vmem>>, vector<1x128x512xbf16>
    %204 = vector.shape_cast %203 : vector<1x128x512xbf16> to vector<128x512xbf16>
    %cst_91 = arith.constant dense<0.000000e+00> : vector<8x512xf32>
    %205 = tpu.matmul %202, %204, %cst_91 {dimension_numbers = #tpu.dot_dimension_numbers<[1], [0], [0], [1], [0, 0, 1, 1], [], []>} : vector<8x128xbf16>, vector<128x512xbf16>, vector<8x512xf32> -> vector<8x512xf32>
    %206 = arith.addf %201, %205 : vector<8x512xf32>
    %207 = vector.extract_strided_slice %206 {offsets = [0, 0], sizes = [8, 128], strides = [1, 1]} : vector<8x512xf32> to vector<8x128xf32>
    %cst_92 = arith.constant 5.000000e-01 : f32
    %208 = vector.broadcast %cst_92 : f32 to vector<8x128xf32>
    %209 = arith.mulf %208, %207 : vector<8x128xf32>
    %210 = math.tanh %209 : vector<8x128xf32>
    %cst_93 = arith.constant 5.000000e-01 : f32
    %211 = vector.broadcast %cst_93 : f32 to vector<8x128xf32>
    %212 = arith.mulf %211, %210 : vector<8x128xf32>
    %cst_94 = arith.constant 5.000000e-01 : f32
    %213 = vector.broadcast %cst_94 : f32 to vector<8x128xf32>
    %214 = arith.addf %212, %213 : vector<8x128xf32>
    %215 = vector.extract_strided_slice %206 {offsets = [0, 128], sizes = [8, 128], strides = [1, 1]} : vector<8x512xf32> to vector<8x128xf32>
    %cst_95 = arith.constant 5.000000e-01 : f32
    %216 = vector.broadcast %cst_95 : f32 to vector<8x128xf32>
    %217 = arith.mulf %216, %215 : vector<8x128xf32>
    %218 = math.tanh %217 : vector<8x128xf32>
    %cst_96 = arith.constant 5.000000e-01 : f32
    %219 = vector.broadcast %cst_96 : f32 to vector<8x128xf32>
    %220 = arith.mulf %219, %218 : vector<8x128xf32>
    %cst_97 = arith.constant 5.000000e-01 : f32
    %221 = vector.broadcast %cst_97 : f32 to vector<8x128xf32>
    %222 = arith.addf %220, %221 : vector<8x128xf32>
    %223 = vector.extract_strided_slice %206 {offsets = [0, 256], sizes = [8, 128], strides = [1, 1]} : vector<8x512xf32> to vector<8x128xf32>
    %224 = math.tanh %223 : vector<8x128xf32>
    %225 = vector.extract_strided_slice %206 {offsets = [0, 384], sizes = [8, 128], strides = [1, 1]} : vector<8x512xf32> to vector<8x128xf32>
    %cst_98 = arith.constant 5.000000e-01 : f32
    %226 = vector.broadcast %cst_98 : f32 to vector<8x128xf32>
    %227 = arith.mulf %226, %225 : vector<8x128xf32>
    %228 = math.tanh %227 : vector<8x128xf32>
    %cst_99 = arith.constant 5.000000e-01 : f32
    %229 = vector.broadcast %cst_99 : f32 to vector<8x128xf32>
    %230 = arith.mulf %229, %228 : vector<8x128xf32>
    %cst_100 = arith.constant 5.000000e-01 : f32
    %231 = vector.broadcast %cst_100 : f32 to vector<8x128xf32>
    %232 = arith.addf %230, %231 : vector<8x128xf32>
    %233 = arith.mulf %222, %190 : vector<8x128xf32>
    %234 = arith.mulf %214, %224 : vector<8x128xf32>
    %235 = arith.addf %233, %234 : vector<8x128xf32>
    %236 = math.tanh %235 : vector<8x128xf32>
    %237 = arith.mulf %232, %236 : vector<8x128xf32>
    %238 = arith.index_cast %199 : i32 to index
    %c0_101 = arith.constant 0 : index
    %239 = vector.load %arg9[%238, %c0_101] : memref<64x128xf32, #tpu.memory_space<vmem>>, vector<8x128xf32>
    tpu.vector_store %arg9[%238, %c0_101], %237 {strides = array<i32>} : memref<64x128xf32, #tpu.memory_space<vmem>>, vector<8x128xf32>,
    %c5_i32 = arith.constant 5 : i32
    %c8_i32_102 = arith.constant 8 : i32
    %240 = arith.muli %c5_i32, %c8_i32_102 : i32
    %241 = tpu.assume_multiple %240, 8 : i32
    %c8_i32_103 = arith.constant 8 : i32
    %242 = arith.muli %c5_i32, %c8_i32_103 : i32
    %c0_i32_104 = arith.constant 0 : i32
    %243 = arith.addi %c0_i32_104, %242 : i32
    %244 = tpu.assume_multiple %243, 8 : i32
    %245 = arith.index_cast %241 : i32 to index
    %c0_105 = arith.constant 0 : index
    %246 = vector.load %arg8[%245, %c0_105] : memref<64x512xf32, #tpu.memory_space<vmem>>, vector<8x512xf32>
    %247 = arith.truncf %237 : vector<8x128xf32> to vector<8x128xbf16>
    %c0_106 = arith.constant 0 : index
    %c0_107 = arith.constant 0 : index
    %c0_108 = arith.constant 0 : index
    %248 = vector.load %arg3[%c0_106, %c0_107, %c0_108] : memref<1x128x512xbf16, #tpu.memory_space<vmem>>, vector<1x128x512xbf16>
    %249 = vector.shape_cast %248 : vector<1x128x512xbf16> to vector<128x512xbf16>
    %cst_109 = arith.constant dense<0.000000e+00> : vector<8x512xf32>
    %250 = tpu.matmul %247, %249, %cst_109 {dimension_numbers = #tpu.dot_dimension_numbers<[1], [0], [0], [1], [0, 0, 1, 1], [], []>} : vector<8x128xbf16>, vector<128x512xbf16>, vector<8x512xf32> -> vector<8x512xf32>
    %251 = arith.addf %246, %250 : vector<8x512xf32>
    %252 = vector.extract_strided_slice %251 {offsets = [0, 0], sizes = [8, 128], strides = [1, 1]} : vector<8x512xf32> to vector<8x128xf32>
    %cst_110 = arith.constant 5.000000e-01 : f32
    %253 = vector.broadcast %cst_110 : f32 to vector<8x128xf32>
    %254 = arith.mulf %253, %252 : vector<8x128xf32>
    %255 = math.tanh %254 : vector<8x128xf32>
    %cst_111 = arith.constant 5.000000e-01 : f32
    %256 = vector.broadcast %cst_111 : f32 to vector<8x128xf32>
    %257 = arith.mulf %256, %255 : vector<8x128xf32>
    %cst_112 = arith.constant 5.000000e-01 : f32
    %258 = vector.broadcast %cst_112 : f32 to vector<8x128xf32>
    %259 = arith.addf %257, %258 : vector<8x128xf32>
    %260 = vector.extract_strided_slice %251 {offsets = [0, 128], sizes = [8, 128], strides = [1, 1]} : vector<8x512xf32> to vector<8x128xf32>
    %cst_113 = arith.constant 5.000000e-01 : f32
    %261 = vector.broadcast %cst_113 : f32 to vector<8x128xf32>
    %262 = arith.mulf %261, %260 : vector<8x128xf32>
    %263 = math.tanh %262 : vector<8x128xf32>
    %cst_114 = arith.constant 5.000000e-01 : f32
    %264 = vector.broadcast %cst_114 : f32 to vector<8x128xf32>
    %265 = arith.mulf %264, %263 : vector<8x128xf32>
    %cst_115 = arith.constant 5.000000e-01 : f32
    %266 = vector.broadcast %cst_115 : f32 to vector<8x128xf32>
    %267 = arith.addf %265, %266 : vector<8x128xf32>
    %268 = vector.extract_strided_slice %251 {offsets = [0, 256], sizes = [8, 128], strides = [1, 1]} : vector<8x512xf32> to vector<8x128xf32>
    %269 = math.tanh %268 : vector<8x128xf32>
    %270 = vector.extract_strided_slice %251 {offsets = [0, 384], sizes = [8, 128], strides = [1, 1]} : vector<8x512xf32> to vector<8x128xf32>
    %cst_116 = arith.constant 5.000000e-01 : f32
    %271 = vector.broadcast %cst_116 : f32 to vector<8x128xf32>
    %272 = arith.mulf %271, %270 : vector<8x128xf32>
    %273 = math.tanh %272 : vector<8x128xf32>
    %cst_117 = arith.constant 5.000000e-01 : f32
    %274 = vector.broadcast %cst_117 : f32 to vector<8x128xf32>
    %275 = arith.mulf %274, %273 : vector<8x128xf32>
    %cst_118 = arith.constant 5.000000e-01 : f32
    %276 = vector.broadcast %cst_118 : f32 to vector<8x128xf32>
    %277 = arith.addf %275, %276 : vector<8x128xf32>
    %278 = arith.mulf %267, %235 : vector<8x128xf32>
    %279 = arith.mulf %259, %269 : vector<8x128xf32>
    %280 = arith.addf %278, %279 : vector<8x128xf32>
    %281 = math.tanh %280 : vector<8x128xf32>
    %282 = arith.mulf %277, %281 : vector<8x128xf32>
    %283 = arith.index_cast %244 : i32 to index
    %c0_119 = arith.constant 0 : index
    %284 = vector.load %arg9[%283, %c0_119] : memref<64x128xf32, #tpu.memory_space<vmem>>, vector<8x128xf32>
    tpu.vector_store %arg9[%283, %c0_119], %282 {strides = array<i32>} : memref<64x128xf32, #tpu.memory_space<vmem>>, vector<8x128xf32>,
    %c6_i32 = arith.constant 6 : i32
    %c8_i32_120 = arith.constant 8 : i32
    %285 = arith.muli %c6_i32, %c8_i32_120 : i32
    %286 = tpu.assume_multiple %285, 8 : i32
    %c8_i32_121 = arith.constant 8 : i32
    %287 = arith.muli %c6_i32, %c8_i32_121 : i32
    %c0_i32_122 = arith.constant 0 : i32
    %288 = arith.addi %c0_i32_122, %287 : i32
    %289 = tpu.assume_multiple %288, 8 : i32
    %290 = arith.index_cast %286 : i32 to index
    %c0_123 = arith.constant 0 : index
    %291 = vector.load %arg8[%290, %c0_123] : memref<64x512xf32, #tpu.memory_space<vmem>>, vector<8x512xf32>
    %292 = arith.truncf %282 : vector<8x128xf32> to vector<8x128xbf16>
    %c0_124 = arith.constant 0 : index
    %c0_125 = arith.constant 0 : index
    %c0_126 = arith.constant 0 : index
    %293 = vector.load %arg3[%c0_124, %c0_125, %c0_126] : memref<1x128x512xbf16, #tpu.memory_space<vmem>>, vector<1x128x512xbf16>
    %294 = vector.shape_cast %293 : vector<1x128x512xbf16> to vector<128x512xbf16>
    %cst_127 = arith.constant dense<0.000000e+00> : vector<8x512xf32>
    %295 = tpu.matmul %292, %294, %cst_127 {dimension_numbers = #tpu.dot_dimension_numbers<[1], [0], [0], [1], [0, 0, 1, 1], [], []>} : vector<8x128xbf16>, vector<128x512xbf16>, vector<8x512xf32> -> vector<8x512xf32>
    %296 = arith.addf %291, %295 : vector<8x512xf32>
    %297 = vector.extract_strided_slice %296 {offsets = [0, 0], sizes = [8, 128], strides = [1, 1]} : vector<8x512xf32> to vector<8x128xf32>
    %cst_128 = arith.constant 5.000000e-01 : f32
    %298 = vector.broadcast %cst_128 : f32 to vector<8x128xf32>
    %299 = arith.mulf %298, %297 : vector<8x128xf32>
    %300 = math.tanh %299 : vector<8x128xf32>
    %cst_129 = arith.constant 5.000000e-01 : f32
    %301 = vector.broadcast %cst_129 : f32 to vector<8x128xf32>
    %302 = arith.mulf %301, %300 : vector<8x128xf32>
    %cst_130 = arith.constant 5.000000e-01 : f32
    %303 = vector.broadcast %cst_130 : f32 to vector<8x128xf32>
    %304 = arith.addf %302, %303 : vector<8x128xf32>
    %305 = vector.extract_strided_slice %296 {offsets = [0, 128], sizes = [8, 128], strides = [1, 1]} : vector<8x512xf32> to vector<8x128xf32>
    %cst_131 = arith.constant 5.000000e-01 : f32
    %306 = vector.broadcast %cst_131 : f32 to vector<8x128xf32>
    %307 = arith.mulf %306, %305 : vector<8x128xf32>
    %308 = math.tanh %307 : vector<8x128xf32>
    %cst_132 = arith.constant 5.000000e-01 : f32
    %309 = vector.broadcast %cst_132 : f32 to vector<8x128xf32>
    %310 = arith.mulf %309, %308 : vector<8x128xf32>
    %cst_133 = arith.constant 5.000000e-01 : f32
    %311 = vector.broadcast %cst_133 : f32 to vector<8x128xf32>
    %312 = arith.addf %310, %311 : vector<8x128xf32>
    %313 = vector.extract_strided_slice %296 {offsets = [0, 256], sizes = [8, 128], strides = [1, 1]} : vector<8x512xf32> to vector<8x128xf32>
    %314 = math.tanh %313 : vector<8x128xf32>
    %315 = vector.extract_strided_slice %296 {offsets = [0, 384], sizes = [8, 128], strides = [1, 1]} : vector<8x512xf32> to vector<8x128xf32>
    %cst_134 = arith.constant 5.000000e-01 : f32
    %316 = vector.broadcast %cst_134 : f32 to vector<8x128xf32>
    %317 = arith.mulf %316, %315 : vector<8x128xf32>
    %318 = math.tanh %317 : vector<8x128xf32>
    %cst_135 = arith.constant 5.000000e-01 : f32
    %319 = vector.broadcast %cst_135 : f32 to vector<8x128xf32>
    %320 = arith.mulf %319, %318 : vector<8x128xf32>
    %cst_136 = arith.constant 5.000000e-01 : f32
    %321 = vector.broadcast %cst_136 : f32 to vector<8x128xf32>
    %322 = arith.addf %320, %321 : vector<8x128xf32>
    %323 = arith.mulf %312, %280 : vector<8x128xf32>
    %324 = arith.mulf %304, %314 : vector<8x128xf32>
    %325 = arith.addf %323, %324 : vector<8x128xf32>
    %326 = math.tanh %325 : vector<8x128xf32>
    %327 = arith.mulf %322, %326 : vector<8x128xf32>
    %328 = arith.index_cast %289 : i32 to index
    %c0_137 = arith.constant 0 : index
    %329 = vector.load %arg9[%328, %c0_137] : memref<64x128xf32, #tpu.memory_space<vmem>>, vector<8x128xf32>
    tpu.vector_store %arg9[%328, %c0_137], %327 {strides = array<i32>} : memref<64x128xf32, #tpu.memory_space<vmem>>, vector<8x128xf32>,
    %c7_i32 = arith.constant 7 : i32
    %c8_i32_138 = arith.constant 8 : i32
    %330 = arith.muli %c7_i32, %c8_i32_138 : i32
    %331 = tpu.assume_multiple %330, 8 : i32
    %c8_i32_139 = arith.constant 8 : i32
    %332 = arith.muli %c7_i32, %c8_i32_139 : i32
    %c0_i32_140 = arith.constant 0 : i32
    %333 = arith.addi %c0_i32_140, %332 : i32
    %334 = tpu.assume_multiple %333, 8 : i32
    %335 = arith.index_cast %331 : i32 to index
    %c0_141 = arith.constant 0 : index
    %336 = vector.load %arg8[%335, %c0_141] : memref<64x512xf32, #tpu.memory_space<vmem>>, vector<8x512xf32>
    %337 = arith.truncf %327 : vector<8x128xf32> to vector<8x128xbf16>
    %c0_142 = arith.constant 0 : index
    %c0_143 = arith.constant 0 : index
    %c0_144 = arith.constant 0 : index
    %338 = vector.load %arg3[%c0_142, %c0_143, %c0_144] : memref<1x128x512xbf16, #tpu.memory_space<vmem>>, vector<1x128x512xbf16>
    %339 = vector.shape_cast %338 : vector<1x128x512xbf16> to vector<128x512xbf16>
    %cst_145 = arith.constant dense<0.000000e+00> : vector<8x512xf32>
    %340 = tpu.matmul %337, %339, %cst_145 {dimension_numbers = #tpu.dot_dimension_numbers<[1], [0], [0], [1], [0, 0, 1, 1], [], []>} : vector<8x128xbf16>, vector<128x512xbf16>, vector<8x512xf32> -> vector<8x512xf32>
    %341 = arith.addf %336, %340 : vector<8x512xf32>
    %342 = vector.extract_strided_slice %341 {offsets = [0, 0], sizes = [8, 128], strides = [1, 1]} : vector<8x512xf32> to vector<8x128xf32>
    %cst_146 = arith.constant 5.000000e-01 : f32
    %343 = vector.broadcast %cst_146 : f32 to vector<8x128xf32>
    %344 = arith.mulf %343, %342 : vector<8x128xf32>
    %345 = math.tanh %344 : vector<8x128xf32>
    %cst_147 = arith.constant 5.000000e-01 : f32
    %346 = vector.broadcast %cst_147 : f32 to vector<8x128xf32>
    %347 = arith.mulf %346, %345 : vector<8x128xf32>
    %cst_148 = arith.constant 5.000000e-01 : f32
    %348 = vector.broadcast %cst_148 : f32 to vector<8x128xf32>
    %349 = arith.addf %347, %348 : vector<8x128xf32>
    %350 = vector.extract_strided_slice %341 {offsets = [0, 128], sizes = [8, 128], strides = [1, 1]} : vector<8x512xf32> to vector<8x128xf32>
    %cst_149 = arith.constant 5.000000e-01 : f32
    %351 = vector.broadcast %cst_149 : f32 to vector<8x128xf32>
    %352 = arith.mulf %351, %350 : vector<8x128xf32>
    %353 = math.tanh %352 : vector<8x128xf32>
    %cst_150 = arith.constant 5.000000e-01 : f32
    %354 = vector.broadcast %cst_150 : f32 to vector<8x128xf32>
    %355 = arith.mulf %354, %353 : vector<8x128xf32>
    %cst_151 = arith.constant 5.000000e-01 : f32
    %356 = vector.broadcast %cst_151 : f32 to vector<8x128xf32>
    %357 = arith.addf %355, %356 : vector<8x128xf32>
    %358 = vector.extract_strided_slice %341 {offsets = [0, 256], sizes = [8, 128], strides = [1, 1]} : vector<8x512xf32> to vector<8x128xf32>
    %359 = math.tanh %358 : vector<8x128xf32>
    %360 = vector.extract_strided_slice %341 {offsets = [0, 384], sizes = [8, 128], strides = [1, 1]} : vector<8x512xf32> to vector<8x128xf32>
    %cst_152 = arith.constant 5.000000e-01 : f32
    %361 = vector.broadcast %cst_152 : f32 to vector<8x128xf32>
    %362 = arith.mulf %361, %360 : vector<8x128xf32>
    %363 = math.tanh %362 : vector<8x128xf32>
    %cst_153 = arith.constant 5.000000e-01 : f32
    %364 = vector.broadcast %cst_153 : f32 to vector<8x128xf32>
    %365 = arith.mulf %364, %363 : vector<8x128xf32>
    %cst_154 = arith.constant 5.000000e-01 : f32
    %366 = vector.broadcast %cst_154 : f32 to vector<8x128xf32>
    %367 = arith.addf %365, %366 : vector<8x128xf32>
    %368 = arith.mulf %357, %325 : vector<8x128xf32>
    %369 = arith.mulf %349, %359 : vector<8x128xf32>
    %370 = arith.addf %368, %369 : vector<8x128xf32>
    %371 = math.tanh %370 : vector<8x128xf32>
    %372 = arith.mulf %367, %371 : vector<8x128xf32>
    %373 = arith.index_cast %334 : i32 to index
    %c0_155 = arith.constant 0 : index
    %374 = vector.load %arg9[%373, %c0_155] : memref<64x128xf32, #tpu.memory_space<vmem>>, vector<8x128xf32>
    tpu.vector_store %arg9[%373, %c0_155], %372 {strides = array<i32>} : memref<64x128xf32, #tpu.memory_space<vmem>>, vector<8x128xf32>,
    %c8_i32_156 = arith.constant 8 : i32
    %c1_i32_157 = arith.constant 1 : i32
    %375 = arith.cmpi eq, %arg0, %c1_i32_157 : i32
    %376 = arith.extui %375 : i1 to i32
    %c0_i32_158 = arith.constant 0 : i32
    %377 = arith.cmpi ne, %376, %c0_i32_158 : i32
    scf.if %377 {
      %378 = arith.truncf %372 : vector<8x128xf32> to vector<8x128xbf16>
      %c0_159 = arith.constant 0 : index
      %c0_160 = arith.constant 0 : index
      %379 = vector.load %arg5[%c0_159, %c0_160] : memref<128x128xbf16, #tpu.memory_space<vmem>>, vector<128x128xbf16>
      %cst_161 = arith.constant dense<0.000000e+00> : vector<8x128xf32>
      %380 = tpu.matmul %378, %379, %cst_161 {dimension_numbers = #tpu.dot_dimension_numbers<[1], [0], [0], [1], [0, 0, 1, 1], [], []>} : vector<8x128xbf16>, vector<128x128xbf16>, vector<8x128xf32> -> vector<8x128xf32>
      %c0_162 = arith.constant 0 : index
      %c0_163 = arith.constant 0 : index
      %381 = vector.load %arg6[%c0_162, %c0_163] : memref<1x128xf32, #tpu.memory_space<vmem>>, vector<1x128xf32>
      %382 = vector.broadcast %381 : vector<1x128xf32> to vector<8x128xf32>
      %383 = arith.addf %380, %382 : vector<8x128xf32>
      %c0_164 = arith.constant 0 : index
      %c0_165 = arith.constant 0 : index
      %384 = vector.load %arg7[%c0_164, %c0_165] : memref<8x128xf32, #tpu.memory_space<vmem>>, vector<8x128xf32>
      tpu.vector_store %arg7[%c0_164, %c0_165], %383 {strides = array<i32>} : memref<8x128xf32, #tpu.memory_space<vmem>>, vector<8x128xf32>,
    } else {
    }
    return
  }
  func.func @transform_0(%arg0: i32) -> (i32, i32) {
    %c0_i32 = arith.constant 0 : i32
    %c0_i32_0 = arith.constant 0 : i32
    %c0_i32_1 = arith.constant 0 : i32
    return %c0_i32, %c0_i32_0 : i32, i32
  }
  func.func @transform_1(%arg0: i32) -> (i32, i32, i32) {
    %c0_i32 = arith.constant 0 : i32
    %c0_i32_0 = arith.constant 0 : i32
    %c0_i32_1 = arith.constant 0 : i32
    return %arg0, %c0_i32, %c0_i32_0 : i32, i32, i32
  }
  func.func @transform_2(%arg0: i32) -> (i32, i32, i32) {
    %c0_i32 = arith.constant 0 : i32
    %c0_i32_0 = arith.constant 0 : i32
    %c0_i32_1 = arith.constant 0 : i32
    return %arg0, %c0_i32, %c0_i32_0 : i32, i32, i32
  }
  func.func @transform_3(%arg0: i32) -> (i32, i32, i32) {
    %c0_i32 = arith.constant 0 : i32
    %c0_i32_0 = arith.constant 0 : i32
    %c0_i32_1 = arith.constant 0 : i32
    return %arg0, %c0_i32, %c0_i32_0 : i32, i32, i32
  }
  func.func @transform_4(%arg0: i32) -> (i32, i32) {
    %c0_i32 = arith.constant 0 : i32
    %c0_i32_0 = arith.constant 0 : i32
    %c0_i32_1 = arith.constant 0 : i32
    return %c0_i32, %c0_i32_0 : i32, i32
  }
  func.func @transform_5(%arg0: i32) -> (i32, i32) {
    %c0_i32 = arith.constant 0 : i32
    %c0_i32_0 = arith.constant 0 : i32
    %c0_i32_1 = arith.constant 0 : i32
    return %c0_i32, %c0_i32_0 : i32, i32
  }
  func.func @transform_6(%arg0: i32) -> (i32, i32) {
    %c0_i32 = arith.constant 0 : i32
    %c0_i32_0 = arith.constant 0 : i32
    %c0_i32_1 = arith.constant 0 : i32
    return %c0_i32, %c0_i32_0 : i32, i32
  }
}

</mosaic_0001>

<bundles_post_ra>
// kernel: lstm_classifier_forward.1
= control target key start
LH: loop header
LB: loop body
LE: loop exit
PB: predicated region body
PF: predicated region fallthrough
CT: control target
= control target key end

     0   :  { %s3978_s21 = smov 0   ;;  %s4693_s0 = inlined_call_operand.vmem [shape: bf16[64,128], index: 0, kind: input, shape index: {}]   ;;  %s4694_s1 = inlined_call_operand.vmem [shape: bf16[2,128,512], index: 1, kind: input, shape index: {}]   ;;  %s4695_s2 = inlined_call_operand.vmem [shape: bf16[2,128,512], index: 2, kind: input, shape index: {}]   ;;  %s4696_s3 = inlined_call_operand.vmem [shape: f32[2,1,512], index: 3, kind: input, shape index: {}]   ;;  %s4697_s4 = inlined_call_operand.vmem [shape: bf16[128,128], index: 4, kind: input, shape index: {}]   ;;  %s4698_s5 = inlined_call_operand.vmem [shape: f32[1,128], index: 5, kind: input, shape index: {}]   ;;  %s4699_s6 = inlined_call_operand.vmem [shape: f32[8,128], index: 6, kind: output, shape index: {}]  }
   0x1 LB: > { %s3984_s22 = sadd.s32 4294967295, %s3938_s21   ;;  %p3332_p0 = scmp.ge.s32.totalorder %s3938_s21, 1  ;;  %s3938_s21 = sphi %s3978_s21, %s16_s21  }
   0x2   : > { %p226_p1 = scmp.lt.s32.totalorder %s3938_s21, 3 }
   0x4   : > { %p227_p2 = pnand %p3332_p0, %p226_p1 }
   0x6   : > { %230 = sbr.rel (%p227_p2) target bundleno = 2312 (0x908), region = 44 }
   0xd   : > { %p260_p3 = scmp.lt.s32.totalorder %s3984_s22, 1  ;;  %p3338_p4 = scmp.ne.s32.totalorder %s3984_s22, 0 }
   0xe   : > { %v3642_v0 = vld [vmem:[%s4693_s0] sm:$0xff] (!%p3338_p4)   ;;  %v3657_v1 = vld [vmem:[%s4693_s0 + $0x8] sm:$0xff] (!%p3338_p4)   ;;  %v3658_v2 = vld [vmem:[%s4693_s0 + $0x10] sm:$0xff] (!%p3338_p4)  }
   0xf   : > { %s261_s23 = scalar_select %p260_p3, %s3984_s22, 1 }
  0x10   : > { %278 = sbr.rel (%p3338_p4) target bundleno = 23 (0x17), region = 48  ;;  %v3643_v3 = vunpack.c.l.bf16 (!%p3338_p4), %v3642_v0  ;;  %v3644_v4 = vunpack.c.h.bf16 (!%p3338_p4), %v3642_v0  ;;  %v3647_v5 = vunpack.c.l.bf16 (!%p3338_p4), %v3657_v1  ;;  %v3648_v6 = vunpack.c.h.bf16 (!%p3338_p4), %v3657_v1  ;;  %v3659_v7 = vld [vmem:[%s4693_s0 + $0x18] sm:$0xff] (!%p3338_p4)  }
  0x11   : > { %s3639_s24 = sshll.u32 %s261_s23, 8  ;;  %s3337_s25 = sshll.u32 %s261_s23, 2  ;;  %v3651_v8 = vunpack.c.l.bf16 (!%p3338_p4), %v3658_v2  ;;  %v3652_v9 = vunpack.c.h.bf16 (!%p3338_p4), %v3658_v2  ;;  %v3655_v10 = vunpack.c.l.bf16 (!%p3338_p4), %v3659_v7  ;;  %v3656_v11 = vunpack.c.h.bf16 (!%p3338_p4), %v3659_v7 }
  0x12   : > { %s3993_s28 = scalar_lea.vmem %s4694_s1, %s3639_s24  ;;  %s3998_s7 = scalar_lea.vmem %s4695_s2, %s3639_s24  ;;  %295 = vst [vmem:[#allocation3] sm:$0xff] (!%p3338_p4), %v3643_v3  ;;  %296 = vst [vmem:[#allocation3 + $0x8] sm:$0xff] (!%p3338_p4), %v3644_v4 }
  0x13   : > { %s4003_s10 = scalar_lea.vmem %s4696_s3, %s3337_s25  ;;  %297 = vst [vmem:[#allocation3 + $0x10] sm:$0xff] (!%p3338_p4), %v3647_v5  ;;  %298 = vst [vmem:[#allocation3 + $0x18] sm:$0xff] (!%p3338_p4), %v3648_v6 }
  0x14   : > { %299 = vst [vmem:[#allocation3 + $0x20] sm:$0xff] (!%p3338_p4), %v3651_v8  ;;  %300 = vst [vmem:[#allocation3 + $0x28] sm:$0xff] (!%p3338_p4), %v3652_v9 }
  0x15   : > { %301 = vst [vmem:[#allocation3 + $0x30] sm:$0xff] (!%p3338_p4), %v3655_v10  ;;  %302 = vst [vmem:[#allocation3 + $0x38] sm:$0xff] (!%p3338_p4), %v3656_v11 }
  0x17 PF: > { %v3700_v12 = vld [vmem:[%s3993_s28 + $0x4] ss:$16 sps:$4 sm:$0xff]   ;;  %v3702_v13 = vld [vmem:[%s3993_s28 + $0xc] ss:$16 sps:$4 sm:$0xff]   ;;  %v4700_v14 = vmov 0   ;;  %p3627_p5 = scmp.ne.s32.totalorder %s3984_s22, 1 }
  0x18   : > { %561 = vmatprep.mubr.bf16.mxu0 %v4700_v14  ;;  %634 = vmatprep.mubr.bf16.mxu1 %v4700_v14  ;;  %v3704_v15 = vld [vmem:[%s3993_s28] ss:$16 sps:$4 sm:$0xff]   ;;  %v3705_v16 = vld [vmem:[%s3993_s28 + $0x8] ss:$16 sps:$4 sm:$0xff]   ;;  %v3706_v17 = vld [vmem:[%s3993_s28 + $0x24] ss:$16 sps:$4 sm:$0xff]  }
  0x19   : > { %529 = vmatprep.subr.bf16.mxu0 %v3700_v12  ;;  %602 = vmatprep.subr.bf16.mxu1 %v3702_v13  ;;  %v3708_v18 = vld [vmem:[%s3993_s28 + $0x2c] ss:$16 sps:$4 sm:$0xff]   ;;  %v3710_v19 = vld [vmem:[%s3993_s28 + $0x20] ss:$16 sps:$4 sm:$0xff]   ;;  %v3711_v20 = vld [vmem:[%s3993_s28 + $0x28] ss:$16 sps:$4 sm:$0xff]  }
  0x1a   : > { %530 = vmatpush1.bf16.msra.mxu0 %v3704_v15  ;;  %603 = vmatpush1.bf16.msra.mxu1 %v3705_v16  ;;  %v3712_v21 = vld [vmem:[%s3993_s28 + $0x44] ss:$16 sps:$4 sm:$0xff]   ;;  %v3714_v22 = vld [vmem:[%s3993_s28 + $0x4c] ss:$16 sps:$4 sm:$0xff]   ;;  %v3716_v23 = vld [vmem:[%s3993_s28 + $0x40] ss:$16 sps:$4 sm:$0xff]  }
  0x1b   : > { %531 = vmatprep.subr.bf16.mxu0 %v3706_v17  ;;  %604 = vmatprep.subr.bf16.mxu1 %v3708_v18  ;;  %v3717_v24 = vld [vmem:[%s3993_s28 + $0x48] ss:$16 sps:$4 sm:$0xff]   ;;  %v3718_v25 = vld [vmem:[%s3993_s28 + $0x64] ss:$16 sps:$4 sm:$0xff]   ;;  %v3720_v26 = vld [vmem:[%s3993_s28 + $0x6c] ss:$16 sps:$4 sm:$0xff]  }
  0x1c   : > { %v3722_v27 = vld [vmem:[%s3993_s28 + $0x60] ss:$16 sps:$4 sm:$0xff]   ;;  %v3723_v28 = vld [vmem:[%s3993_s28 + $0x68] ss:$16 sps:$4 sm:$0xff]   ;;  %v3724_v29 = vld [vmem:[%s3993_s28 + $0x84] ss:$16 sps:$4 sm:$0xff]  }
  0x1d   : > { %v3726_v30 = vld [vmem:[%s3993_s28 + $0x8c] ss:$16 sps:$4 sm:$0xff]   ;;  %v3728_v31 = vld [vmem:[%s3993_s28 + $0x80] ss:$16 sps:$4 sm:$0xff]   ;;  %v3729_v32 = vld [vmem:[%s3993_s28 + $0x88] ss:$16 sps:$4 sm:$0xff]  }
  0x1e   : > { %532 = vmatpush1.bf16.msra.mxu0 %v3710_v19  ;;  %605 = vmatpush1.bf16.msra.mxu1 %v3711_v20  ;;  %v3730_v33 = vld [vmem:[%s3993_s28 + $0xa4] ss:$16 sps:$4 sm:$0xff]   ;;  %v3732_v34 = vld [vmem:[%s3993_s28 + $0xac] ss:$16 sps:$4 sm:$0xff]   ;;  %v3734_v35 = vld [vmem:[%s3993_s28 + $0xa0] ss:$16 sps:$4 sm:$0xff]  }
  0x1f   : > { %533 = vmatprep.subr.bf16.mxu0 %v3712_v21  ;;  %606 = vmatprep.subr.bf16.mxu1 %v3714_v22  ;;  %v3735_v36 = vld [vmem:[%s3993_s28 + $0xa8] ss:$16 sps:$4 sm:$0xff]   ;;  %v3736_v37 = vld [vmem:[%s3993_s28 + $0xc4] ss:$16 sps:$4 sm:$0xff]   ;;  %v3738_v38 = vld [vmem:[%s3993_s28 + $0xcc] ss:$16 sps:$4 sm:$0xff]  }
  0x20   : > { %v3740_v39 = vld [vmem:[%s3993_s28 + $0xc0] ss:$16 sps:$4 sm:$0xff]   ;;  %v3741_v40 = vld [vmem:[%s3993_s28 + $0xc8] ss:$16 sps:$4 sm:$0xff]   ;;  %v3742_v41 = vld [vmem:[%s3993_s28 + $0xe4] ss:$16 sps:$4 sm:$0xff]  }
  0x21   : > { %v3744_v42 = vld [vmem:[%s3993_s28 + $0xec] ss:$16 sps:$4 sm:$0xff]   ;;  %v3746_v43 = vld [vmem:[%s3993_s28 + $0xe0] ss:$16 sps:$4 sm:$0xff]   ;;  %v3747_v44 = vld [vmem:[%s3993_s28 + $0xe8] ss:$16 sps:$4 sm:$0xff]  }
  0x22   : > { %534 = vmatpush1.bf16.msra.mxu0 %v3716_v23  ;;  %607 = vmatpush1.bf16.msra.mxu1 %v3717_v24  ;;  %v304_v45 = vld [vmem:[#allocation3] sm:$0xff]  ;;  %v305_v46 = vld [vmem:[#allocation3 + $0x8] sm:$0xff]  ;;  %v306_v56 = vld [vmem:[#allocation3 + $0x10] sm:$0xff]  ;;  %vm3942_vm0 = vmmov (!%p3627_p5), 0  }
  0x23   : > { %535 = vmatprep.subr.bf16.mxu0 %v3718_v25  ;;  %608 = vmatprep.subr.bf16.mxu1 %v3720_v26  ;;  %v4053_v47 = vld [vmem:[%s3998_s7 + $0x4] ss:$16 sps:$4 sm:$0xff]   ;;  %v4056_v48 = vld [vmem:[%s3998_s7 + $0xc] ss:$16 sps:$4 sm:$0xff]   ;;  %v312_v49 = vpack.c.bf16 %v305_v46, %v304_v45  ;;  %v4059_v50 = vld [vmem:[%s3998_s7] ss:$16 sps:$4 sm:$0xff]   ;;  %v349_v26 = vlaneseq }
  0x24   : > { %v4062_v51 = vld [vmem:[%s3998_s7 + $0x8] ss:$16 sps:$4 sm:$0xff]   ;;  %v4067_v52 = vld [vmem:[%s3998_s7 + $0x24] ss:$16 sps:$4 sm:$0xff]   ;;  %v4070_v53 = vld [vmem:[%s3998_s7 + $0x2c] ss:$16 sps:$4 sm:$0xff]  }
  0x25   : > { %v4073_v54 = vld [vmem:[%s3998_s7 + $0x20] ss:$16 sps:$4 sm:$0xff]   ;;  %v4076_v55 = vld [vmem:[%s3998_s7 + $0x28] ss:$16 sps:$4 sm:$0xff]   ;;  %v4083_v58 = vld [vmem:[%s3998_s7 + $0x44] ss:$16 sps:$4 sm:$0xff]  }
  0x26   : > { %536 = vmatpush1.bf16.msra.mxu0 %v3722_v27  ;;  %609 = vmatpush1.bf16.msra.mxu1 %v3723_v28  ;;  %v307_v57 = vld [vmem:[#allocation3 + $0x18] sm:$0xff]  ;;  %v4091_v61 = vld [vmem:[%s3998_s7 + $0x40] ss:$16 sps:$4 sm:$0xff]   ;;  %v4099_v63 = vld [vmem:[%s3998_s7 + $0x64] ss:$16 sps:$4 sm:$0xff]   ;;  %v350_v27 = vshrl.u32 %v349_v26, 7 }
  0x27   : > { %537 = vmatprep.subr.bf16.mxu0 %v3724_v29  ;;  %610 = vmatprep.subr.bf16.mxu1 %v3726_v30  ;;  %v4086_v59 = vld [vmem:[%s3998_s7 + $0x4c] ss:$16 sps:$4 sm:$0xff]   ;;  %v313_v60 = vpack.c.bf16 %v307_v57, %v306_v56  ;;  %v4094_v62 = vld [vmem:[%s3998_s7 + $0x48] ss:$16 sps:$4 sm:$0xff]   ;;  %v4107_v1 = vld [vmem:[%s3998_s7 + $0x60] ss:$16 sps:$4 sm:$0xff]  }
  0x28   : > { %v4104_v0 = vld [vmem:[%s3998_s7 + $0x6c] ss:$16 sps:$4 sm:$0xff]   ;;  %v4110_v2 = vld [vmem:[%s3998_s7 + $0x68] ss:$16 sps:$4 sm:$0xff]   ;;  %v308_v3 = vld [vmem:[#allocation3 + $0x20] sm:$0xff]  ;;  %v359_v28 = vsub.s32 2, %v350_v27 }
  0x29   : > { %v309_v4 = vld [vmem:[#allocation3 + $0x28] sm:$0xff]  ;;  %v4117_v5 = vld [vmem:[%s3998_s7 + $0x84] ss:$16 sps:$4 sm:$0xff]   ;;  %v4125_v7 = vld [vmem:[%s3998_s7 + $0x80] ss:$16 sps:$4 sm:$0xff]   ;;  %v363_v29 = vsub.s32 3, %v350_v27 }
  0x2a   : > { %538 = vmatpush1.bf16.msra.mxu0 %v3728_v31  ;;  %611 = vmatpush1.bf16.msra.mxu1 %v3729_v32  ;;  %v4120_v6 = vld [vmem:[%s3998_s7 + $0x8c] ss:$16 sps:$4 sm:$0xff]   ;;  %v4128_v8 = vld [vmem:[%s3998_s7 + $0x88] ss:$16 sps:$4 sm:$0xff]   ;;  %v314_v9 = vpack.c.bf16 %v309_v4, %v308_v3  ;;  %v4131_v10 = vld [vmem:[%s3998_s7 + $0xa4] ss:$16 sps:$4 sm:$0xff]  }
  0x2b   : > { %539 = vmatprep.subr.bf16.mxu0 %v3730_v33  ;;  %612 = vmatprep.subr.bf16.mxu1 %v3732_v34  ;;  %v4134_v11 = vld [vmem:[%s3998_s7 + $0xac] ss:$16 sps:$4 sm:$0xff]   ;;  %v4141_v12 = vld [vmem:[%s3998_s7 + $0xa0] ss:$16 sps:$4 sm:$0xff]   ;;  %v4144_v13 = vld [vmem:[%s3998_s7 + $0xa8] ss:$16 sps:$4 sm:$0xff]  }
  0x2c   : > { %v310_v15 = vld [vmem:[#allocation3 + $0x30] sm:$0xff]  ;;  %v311_v16 = vld [vmem:[#allocation3 + $0x38] sm:$0xff]  ;;  %v351_v30 = vsub.s32 0, %v350_v27  ;;  %v303_v31 = vld [vmem:[%s4003_s10] sm:$0xf]  ;;  %v355_v32 = vsub.s32 1, %v350_v27 }
  0x2d   : > { %v4147_v17 = vld [vmem:[%s3998_s7 + $0xc4] ss:$16 sps:$4 sm:$0xff]   ;;  %v4150_v18 = vld [vmem:[%s3998_s7 + $0xcc] ss:$16 sps:$4 sm:$0xff]   ;;  %v315_v19 = vpack.c.bf16 %v311_v16, %v310_v15  ;;  %v4161_v20 = vld [vmem:[%s3998_s7 + $0xc0] ss:$16 sps:$4 sm:$0xff]   ;;  %v4227_v33 = vrot.slane %v303_v31, %v359_v28 }
  0x2e   : > { %540 = vmatpush1.bf16.msra.mxu0 %v3734_v35  ;;  %613 = vmatpush1.bf16.msra.mxu1 %v3735_v36  ;;  %v4164_v21 = vld [vmem:[%s3998_s7 + $0xc8] ss:$16 sps:$4 sm:$0xff]   ;;  %v4169_v22 = vld [vmem:[%s3998_s7 + $0xe4] ss:$16 sps:$4 sm:$0xff]   ;;  %v4172_v23 = vld [vmem:[%s3998_s7 + $0xec] ss:$16 sps:$4 sm:$0xff]   ;;  %v4233_v36 = vrot.slane %v303_v31, %v363_v29 }
  0x2f   : > { %541 = vmatprep.subr.bf16.mxu0 %v3736_v37  ;;  %614 = vmatprep.subr.bf16.mxu1 %v3738_v38  ;;  %v4177_v24 = vld [vmem:[%s3998_s7 + $0xe0] ss:$16 sps:$4 sm:$0xff]   ;;  %v4180_v25 = vld [vmem:[%s3998_s7 + $0xe8] ss:$16 sps:$4 sm:$0xff]   ;;  %v352_v37 = vrot.slane %v303_v31, %v351_v30 }
  0x32   : > { %542 = vmatpush1.bf16.msra.mxu0 %v3740_v39  ;;  %615 = vmatpush1.bf16.msra.mxu1 %v3741_v40  ;;  %v356_v40 = vrot.slane %v303_v31, %v355_v32 }
  0x33   : > { %543 = vmatprep.subr.bf16.mxu0 %v3742_v41  ;;  %616 = vmatprep.subr.bf16.mxu1 %v3744_v42 }
  0x36   : > { %544 = vmatpush1.bf16.msra.mxu0 %v3746_v43  ;;  %617 = vmatpush1.bf16.msra.mxu1 %v3747_v44 }
  0x37   : > { %906 = vmatprep.subr.bf16.mxu0 %v4053_v47  ;;  %947 = vmatprep.subr.bf16.mxu1 %v4056_v48 }
  0x39   : > { %562 = vmatmul.mubr.bf16.vlgmr.msra.gmra.mrb[0].mxu0 %v312_v49  ;;  %635 = vmatmul.mubr.bf16.vlgmr.msra.gmra.mrb[0].mxu1 %v312_v49 }
  0x3a   : > { %907 = vmatpush1.bf16.msra.mxu0 %v4059_v50  ;;  %948 = vmatpush1.bf16.msra.mxu1 %v4062_v51 }
  0x3b   : > { %908 = vmatprep.subr.bf16.mxu0 %v4067_v52  ;;  %949 = vmatprep.subr.bf16.mxu1 %v4070_v53 }
  0x3c   : > { %571 = vmatprep.mubr.bf16.mxu0 %v4700_v14  ;;  %644 = vmatprep.mubr.bf16.mxu1 %v4700_v14 }
  0x3e   : > { %909 = vmatpush1.bf16.msra.mxu0 %v4073_v54  ;;  %950 = vmatpush1.bf16.msra.mxu1 %v4076_v55 }
  0x3f   : > { %910 = vmatprep.subr.bf16.mxu0 %v4083_v58  ;;  %951 = vmatprep.subr.bf16.mxu1 %v4086_v59 }
  0x41   : > { %572 = vmatmul.mubr.bf16.gmra.mrb[4].mxu0 %v313_v60  ;;  %645 = vmatmul.mubr.bf16.gmra.mrb[4].mxu1 %v313_v60 }
  0x42   : > { %911 = vmatpush1.bf16.msra.mxu0 %v4091_v61  ;;  %952 = vmatpush1.bf16.msra.mxu1 %v4094_v62 }
  0x43   : > { %912 = vmatprep.subr.bf16.mxu0 %v4099_v63  ;;  %953 = vmatprep.subr.bf16.mxu1 %v4104_v0 }
  0x44   : > { %581 = vmatprep.mubr.bf16.mxu0 %v4700_v14  ;;  %654 = vmatprep.mubr.bf16.mxu1 %v4700_v14 }
  0x46   : > { %913 = vmatpush1.bf16.msra.mxu0 %v4107_v1  ;;  %954 = vmatpush1.bf16.msra.mxu1 %v4110_v2 }
  0x47   : > { %914 = vmatprep.subr.bf16.mxu0 %v4117_v5  ;;  %955 = vmatprep.subr.bf16.mxu1 %v4120_v6 }
  0x49   : > { %582 = vmatmul.mubr.bf16.gmra.mrb[8].mxu0 %v314_v9  ;;  %655 = vmatmul.mubr.bf16.gmra.mrb[8].mxu1 %v314_v9 }
  0x4a   : > { %915 = vmatpush1.bf16.msra.mxu0 %v4125_v7  ;;  %956 = vmatpush1.bf16.msra.mxu1 %v4128_v8 }
  0x4b   : > { %916 = vmatprep.subr.bf16.mxu0 %v4131_v10  ;;  %957 = vmatprep.subr.bf16.mxu1 %v4134_v11 }
  0x4c   : > { %591 = vmatprep.mubr.bf16.mxu0 %v4700_v14  ;;  %664 = vmatprep.mubr.bf16.mxu1 %v4700_v14 }
  0x4e   : > { %917 = vmatpush1.bf16.msra.mxu0 %v4141_v12  ;;  %958 = vmatpush1.bf16.msra.mxu1 %v4144_v13 }
  0x4f   : > { %918 = vmatprep.subr.bf16.mxu0 %v4147_v17  ;;  %959 = vmatprep.subr.bf16.mxu1 %v4150_v18 }
  0x51   : > { %592 = vmatmul.mubr.bf16.gmra.mrb[12].mxu0 %v315_v19  ;;  %665 = vmatmul.mubr.bf16.gmra.mrb[12].mxu1 %v315_v19 }
  0x52   : > { %919 = vmatpush1.bf16.msra.mxu0 %v4161_v20  ;;  %960 = vmatpush1.bf16.msra.mxu1 %v4164_v21 }
  0x53   : > { %920 = vmatprep.subr.bf16.mxu0 %v4169_v22  ;;  %961 = vmatprep.subr.bf16.mxu1 %v4172_v23 }
  0x54   : > { %938 = vmatprep.mubr.bf16.mxu0 %v4700_v14  ;;  %979 = vmatprep.mubr.bf16.mxu1 %v4700_v14 }
  0x56   : > { %921 = vmatpush1.bf16.msra.mxu0 %v4177_v24  ;;  %962 = vmatpush1.bf16.msra.mxu1 %v4180_v25 }
  0x57   : > { %1211 = vmatprep.subr.bf16.mxu0 %v4053_v47  ;;  %1252 = vmatprep.subr.bf16.mxu1 %v4056_v48 }
  0x59   : > { %939 = vmatmul.mubr.bf16.vlgmr.msra.gmra.mrb[16].mxu0 %v4700_v14  ;;  %980 = vmatmul.mubr.bf16.vlgmr.msra.gmra.mrb[16].mxu1 %v4700_v14 }
  0x5a   : > { %1212 = vmatpush1.bf16.msra.mxu0 %v4059_v50  ;;  %1253 = vmatpush1.bf16.msra.mxu1 %v4062_v51 }
  0x5b   : > { %1213 = vmatprep.subr.bf16.mxu0 %v4067_v52  ;;  %1254 = vmatprep.subr.bf16.mxu1 %v4070_v53 }
  0x5c   : > { %1243 = vmatprep.mubr.bf16.mxu0 %v4700_v14  ;;  %1284 = vmatprep.mubr.bf16.mxu1 %v4700_v14 }
  0x5e   : > { %1214 = vmatpush1.bf16.msra.mxu0 %v4073_v54  ;;  %1255 = vmatpush1.bf16.msra.mxu1 %v4076_v55 }
  0x5f   : > { %1215 = vmatprep.subr.bf16.mxu0 %v4083_v58  ;;  %1256 = vmatprep.subr.bf16.mxu1 %v4086_v59 }
  0x62   : > { %1216 = vmatpush1.bf16.msra.mxu0 %v4091_v61  ;;  %1257 = vmatpush1.bf16.msra.mxu1 %v4094_v62 }
  0x63   : > { %1217 = vmatprep.subr.bf16.mxu0 %v4099_v63  ;;  %1258 = vmatprep.subr.bf16.mxu1 %v4104_v0 }
  0x66   : > { %1218 = vmatpush1.bf16.msra.mxu0 %v4107_v1  ;;  %1259 = vmatpush1.bf16.msra.mxu1 %v4110_v2 }
  0x67   : > { %1219 = vmatprep.subr.bf16.mxu0 %v4117_v5  ;;  %1260 = vmatprep.subr.bf16.mxu1 %v4120_v6 }
  0x6a   : > { %1220 = vmatpush1.bf16.msra.mxu0 %v4125_v7  ;;  %1261 = vmatpush1.bf16.msra.mxu1 %v4128_v8 }
  0x6b   : > { %1221 = vmatprep.subr.bf16.mxu0 %v4131_v10  ;;  %1262 = vmatprep.subr.bf16.mxu1 %v4134_v11 }
  0x6e   : > { %1222 = vmatpush1.bf16.msra.mxu0 %v4141_v12  ;;  %1263 = vmatpush1.bf16.msra.mxu1 %v4144_v13 }
  0x6f   : > { %1223 = vmatprep.subr.bf16.mxu0 %v4147_v17  ;;  %1264 = vmatprep.subr.bf16.mxu1 %v4150_v18 }
  0x72   : > { %1224 = vmatpush1.bf16.msra.mxu0 %v4161_v20  ;;  %1265 = vmatpush1.bf16.msra.mxu1 %v4164_v21 }
  0x73   : > { %1225 = vmatprep.subr.bf16.mxu0 %v4169_v22  ;;  %1266 = vmatprep.subr.bf16.mxu1 %v4172_v23 }
  0x76   : > { %1226 = vmatpush1.bf16.msra.mxu0 %v4177_v24  ;;  %1267 = vmatpush1.bf16.msra.mxu1 %v4180_v25 }
  0x77   : > { %1517 = vmatprep.subr.bf16.mxu0 %v4053_v47  ;;  %1558 = vmatprep.subr.bf16.mxu1 %v4056_v48 }
 0x10c   : > { %v4229_v34 = vpop.f32.mrb[0].mxu0  ;;  %v4231_v35 = vpop.f32.mrb[0].mxu1 }
 0x10d   : > { %v565_v38 = vpop.f32.mrb[1].mxu0  ;;  %v638_v39 = vpop.f32.mrb[1].mxu1 }
 0x10e   : > { %v567_v41 = vpop.f32.mrb[2].mxu0  ;;  %v640_v42 = vpop.f32.mrb[2].mxu1 }
 0x10f   : > { %v4235_v43 = vadd.f32 %v567_v41, %v352_v37  ;;  %v569_v44 = vpop.f32.mrb[3].mxu0  ;;  %v4238_v45 = vadd.f32 %v640_v42, %v4227_v33  ;;  %v642_v46 = vpop.f32.mrb[3].mxu1 }
 0x110   : > { %v4240_v49 = vadd.f32 %v569_v44, %v356_v40  ;;  %v4243_v56 = vadd.f32 %v642_v46, %v4233_v36 }
 0x114   : > { %v573_v57 = vpop.f32.mrb[4].mxu0  ;;  %v646_v60 = vpop.f32.mrb[4].mxu1 }
 0x115   : > { %v4245_v3 = vadd.f32 %v573_v57, %v352_v37  ;;  %v575_v4 = vpop.f32.mrb[5].mxu0  ;;  %v4248_v9 = vadd.f32 %v646_v60, %v4227_v33  ;;  %v648_v15 = vpop.f32.mrb[5].mxu1 }
 0x116   : > { %v4250_v16 = vadd.f32 %v575_v4, %v356_v40  ;;  %v577_v19 = vpop.f32.mrb[6].mxu0  ;;  %v4253_v26 = vadd.f32 %v648_v15, %v4233_v36  ;;  %v650_v27 = vpop.f32.mrb[6].mxu1 }
 0x117   : > { %v4255_v28 = vadd.f32 %v577_v19, %v352_v37  ;;  %v579_v29 = vpop.f32.mrb[7].mxu0  ;;  %v4258_v30 = vadd.f32 %v650_v27, %v4227_v33  ;;  %v652_v31 = vpop.f32.mrb[7].mxu1 }
 0x118   : > { %4702 = vst [vmem:[#allocation4_spill] sm:$0xff] %v4253_v26  ;;  %v4260_v32 = vadd.f32 %v579_v29, %v356_v40  ;;  %v4263_v41 = vadd.f32 %v652_v31, %v4233_v36 }
 0x119   : > { %4703 = vst [vmem:[#allocation5_spill] sm:$0xff] %v4255_v28  ;;  %4704 = vst [vmem:[#allocation6_spill] sm:$0xff] %v4258_v30 }
 0x11a   : > { %4705 = vst [vmem:[#allocation7_spill] sm:$0xff] %v4260_v32  ;;  %4706 = vst [vmem:[#allocation8_spill] sm:$0xff] %v4263_v41 }
 0x11c   : > { %v583_v42 = vpop.f32.mrb[8].mxu0  ;;  %v656_v44 = vpop.f32.mrb[8].mxu1 }
 0x11d   : > { %v4265_v46 = vadd.f32 %v583_v42, %v352_v37  ;;  %v585_v57 = vpop.f32.mrb[9].mxu0  ;;  %v4268_v60 = vadd.f32 %v656_v44, %v4227_v33  ;;  %v658_v4 = vpop.f32.mrb[9].mxu1 }
 0x11e   : > { %v4270_v15 = vadd.f32 %v585_v57, %v356_v40  ;;  %v587_v19 = vpop.f32.mrb[10].mxu0  ;;  %v4273_v27 = vadd.f32 %v658_v4, %v4233_v36  ;;  %v660_v29 = vpop.f32.mrb[10].mxu1 }
 0x11f   : > { %4707 = vst [vmem:[#allocation9_spill] sm:$0xff] %v4265_v46  ;;  %4708 = vst [vmem:[#allocation10_spill] sm:$0xff] %v4268_v60  ;;  %v4275_v14 = vadd.f32 %v587_v19, %v352_v37  ;;  %v589_v31 = vpop.f32.mrb[11].mxu0  ;;  %v4278_v41 = vadd.f32 %v660_v29, %v4227_v33  ;;  %v662_v42 = vpop.f32.mrb[11].mxu1 }
 0x120   : > { %4709 = vst [vmem:[#allocation11_spill] sm:$0xff] %v4270_v15  ;;  %4710 = vst [vmem:[#allocation12_spill] sm:$0xff] %v4273_v27  ;;  %v4280_v46 = vadd.f32 %v589_v31, %v356_v40  ;;  %v4283_v44 = vadd.f32 %v662_v42, %v4233_v36 }
 0x121   : > { %4711 = vst [vmem:[#allocation13_spill] sm:$0xff] %v4275_v14  ;;  %4712 = vst [vmem:[#allocation14_spill] sm:$0xff] %v4278_v41 }
 0x122   : > { %4713 = vst [vmem:[#allocation15_spill] sm:$0xff] %v4280_v46  ;;  %4714 = vst [vmem:[#allocation16_spill] sm:$0xff] %v4283_v44 }
 0x124   : > { %v593_v60 = vpop.f32.mrb[12].mxu0  ;;  %v666_v57 = vpop.f32.mrb[12].mxu1 }
 0x125   : > { %v4285_v15 = vadd.f32 %v593_v60, %v352_v37  ;;  %v595_v32 = vpop.f32.mrb[13].mxu0  ;;  %v4288_v4 = vadd.f32 %v666_v57, %v4227_v33  ;;  %v668_v19 = vpop.f32.mrb[13].mxu1 }
 0x126   : > { %v4290_v14 = vadd.f32 %v595_v32, %v356_v40  ;;  %v597_v27 = vpop.f32.mrb[14].mxu0  ;;  %v4293_v29 = vadd.f32 %v668_v19, %v4233_v36  ;;  %v670_v31 = vpop.f32.mrb[14].mxu1  ;;  %v564_v32 = vadd.f32 %v4229_v34, %v352_v37  ;;  %v566_v19 = vadd.f32 %v565_v38, %v356_v40 }
 0x127   : > { %4715 = vst [vmem:[#allocation17_spill] sm:$0xff] %v4285_v15  ;;  %4716 = vst [vmem:[#allocation18_spill] sm:$0xff] %v4288_v4  ;;  %v4295_v46 = vadd.f32 %v597_v27, %v352_v37  ;;  %v599_v42 = vpop.f32.mrb[15].mxu0  ;;  %v4298_v44 = vadd.f32 %v670_v31, %v4227_v33  ;;  %v672_v60 = vpop.f32.mrb[15].mxu1 }
 0x128   : > { %4717 = vst [vmem:[#allocation19_spill] sm:$0xff] %v4290_v14  ;;  %4718 = vst [vmem:[#allocation20_spill] sm:$0xff] %v4293_v29  ;;  %v4300_v15 = vadd.f32 %v599_v42, %v356_v40  ;;  %v4303_v57 = vadd.f32 %v672_v60, %v4233_v36  ;;  %v637_v14 = vadd.f32 %v4231_v35, %v4227_v33 }
 0x129   : > { %4719 = vst [vmem:[#allocation21_spill] sm:$0xff] %v4295_v46  ;;  %4720 = vst [vmem:[#allocation22_spill] sm:$0xff] %v4298_v44  ;;  %v639_v29 = vadd.f32 %v638_v39, %v4233_v36 }
 0x12a   : > { %4721 = vst [vmem:[#allocation23_spill] sm:$0xff] %v4300_v15  ;;  %4722 = vst [vmem:[#allocation24_spill] sm:$0xff] %v4303_v57 }
 0x12c   : > { %v940_v27 = vpop.f32.mrb[16].mxu0  ;;  %v981_v46 = vpop.f32.mrb[16].mxu1 }
 0x12d   : > { %v988_v4 = vadd.f32 %v940_v27, %v564_v32  ;;  %v990_v41 = vadd.f32 %v981_v46, %v637_v14  ;;  %v942_v31 = vpop.f32.mrb[17].mxu0  ;;  %v983_v44 = vpop.f32.mrb[17].mxu1 }
 0x12e   : > { %v989_v30 = vadd.f32 %v942_v31, %v566_v19  ;;  %v991_v42 = vadd.f32 %v983_v44, %v639_v29  ;;  %v944_v15 = vpop.f32.mrb[18].mxu0  ;;  %v985_v28 = vpop.f32.mrb[18].mxu1 }
 0x12f   : > { %v992_v60 = vmul.f32 0.5, %v988_v4  ;;  %v945_v57 = vpop.f32.mrb[19].mxu0  ;;  %v986_v26 = vpop.f32.mrb[19].mxu1 }
 0x130   : > { %v996_v34 = vmul.f32 0.5, %v989_v30  ;;  %v1001_v33 = vmul.f32 0.5, %v991_v42  ;;  %v4723_v57 = vmov 0  }
 0x131   : > { %3844 = vtanh.f32 %v992_v60 }
 0x132   : > { %3846 = vtanh.f32 %v996_v34 }
 0x133   : > { %3848 = vtanh.f32 %v990_v41 }
 0x134   : > { %3850 = vtanh.f32 %v1001_v33 }
 0x13b   : > { %v3845_v35 = vpop.eup %3844 }
 0x13c   : > { %v3847_v36 = vpop.eup %3846  ;;  %v994_v37 = vmul.f32 0.5, %v3845_v35 }
 0x13d   : > { %v998_v38 = vmul.f32 0.5, %v3847_v36  ;;  %v3849_v39 = vpop.eup %3848 }
 0x13e   : > { %v995_v14 = vadd.f32 0.5, %v994_v37  ;;  %v3851_v26 = vpop.eup %3850 }
 0x13f   : > { %v999_v40 = vadd.f32 0.5, %v998_v38  ;;  %v1003_v28 = vmul.f32 0.5, %v3851_v26 }
 0x140   : > { %v1006_v46 = vmul.f32 %v3849_v39, %v995_v14 }
 0x141   : > { %v1005_v44 = vmul.f32 0.0, %v999_v40  ;;  %v1004_v30 = vadd.f32 0.5, %v1003_v28 }
 0x143   : > { %v4309_v15 = vadd.f32 %v1006_v46, %v1005_v44 }
 0x145   : > { %3852 = vtanh.f32 %v4309_v15 }
 0x14f   : > { %v3853_v4 = vpop.eup %3852 }
 0x150   : > { %v1009_v41 = vmul.f32 %v3853_v4, %v1004_v30 }
 0x152   : > { %1010 = vst [vmem:[#allocation3] sm:$0xff] %v1009_v41  ;;  %v1018_v29 = vpack.c.bf16 %v1009_v41, %v1009_v41 }
 0x154   : > { %1244 = vmatmul.mubr.bf16.vlgmr.msra.gmra.mrb[20].mxu0 %v1018_v29  ;;  %1285 = vmatmul.mubr.bf16.vlgmr.msra.gmra.mrb[20].mxu1 %v1018_v29 }
 0x155   : > { %1518 = vmatpush1.bf16.msra.mxu0 %v4059_v50  ;;  %1559 = vmatpush1.bf16.msra.mxu1 %v4062_v51 }
 0x156   : > { %1519 = vmatprep.subr.bf16.mxu0 %v4067_v52  ;;  %1560 = vmatprep.subr.bf16.mxu1 %v4070_v53 }
 0x157   : > { %1549 = vmatprep.mubr.bf16.mxu0 %v4723_v57  ;;  %1590 = vmatprep.mubr.bf16.mxu1 %v4723_v57 }
 0x159   : > { %1520 = vmatpush1.bf16.msra.mxu0 %v4073_v54  ;;  %1561 = vmatpush1.bf16.msra.mxu1 %v4076_v55 }
 0x15a   : > { %1521 = vmatprep.subr.bf16.mxu0 %v4083_v58  ;;  %1562 = vmatprep.subr.bf16.mxu1 %v4086_v59 }
 0x15d   : > { %1522 = vmatpush1.bf16.msra.mxu0 %v4091_v61  ;;  %1563 = vmatpush1.bf16.msra.mxu1 %v4094_v62 }
 0x15e   : > { %1523 = vmatprep.subr.bf16.mxu0 %v4099_v63  ;;  %1564 = vmatprep.subr.bf16.mxu1 %v4104_v0 }
 0x161   : > { %1524 = vmatpush1.bf16.msra.mxu0 %v4107_v1  ;;  %1565 = vmatpush1.bf16.msra.mxu1 %v4110_v2 }
 0x162   : > { %1525 = vmatprep.subr.bf16.mxu0 %v4117_v5  ;;  %1566 = vmatprep.subr.bf16.mxu1 %v4120_v6 }
 0x165   : > { %1526 = vmatpush1.bf16.msra.mxu0 %v4125_v7  ;;  %1567 = vmatpush1.bf16.msra.mxu1 %v4128_v8 }
 0x166   : > { %1527 = vmatprep.subr.bf16.mxu0 %v4131_v10  ;;  %1568 = vmatprep.subr.bf16.mxu1 %v4134_v11 }
 0x169   : > { %1528 = vmatpush1.bf16.msra.mxu0 %v4141_v12  ;;  %1569 = vmatpush1.bf16.msra.mxu1 %v4144_v13 }
 0x16a   : > { %1529 = vmatprep.subr.bf16.mxu0 %v4147_v17  ;;  %1570 = vmatprep.subr.bf16.mxu1 %v4150_v18 }
 0x16d   : > { %1530 = vmatpush1.bf16.msra.mxu0 %v4161_v20  ;;  %1571 = vmatpush1.bf16.msra.mxu1 %v4164_v21 }
 0x16e   : > { %1531 = vmatprep.subr.bf16.mxu0 %v4169_v22  ;;  %1572 = vmatprep.subr.bf16.mxu1 %v4172_v23 }
 0x171   : > { %1532 = vmatpush1.bf16.msra.mxu0 %v4177_v24  ;;  %1573 = vmatpush1.bf16.msra.mxu1 %v4180_v25 }
 0x172   : > { %1823 = vmatprep.subr.bf16.mxu0 %v4053_v47  ;;  %1864 = vmatprep.subr.bf16.mxu1 %v4056_v48 }
 0x227   : > { %v1245_v32 = vpop.f32.mrb[20].mxu0  ;;  %v1286_v19 = vpop.f32.mrb[20].mxu1 }
 0x228   : > { %v1293_v27 = vadd.f32 %v1245_v32, %v4235_v43  ;;  %v1295_v31 = vadd.f32 %v1286_v19, %v4238_v45  ;;  %v1247_v42 = vpop.f32.mrb[21].mxu0  ;;  %v1288_v60 = vpop.f32.mrb[21].mxu1 }
 0x229   : > { %v1294_v34 = vadd.f32 %v1247_v42, %v4240_v49  ;;  %v1296_v33 = vadd.f32 %v1288_v60, %v4243_v56  ;;  %v1249_v35 = vpop.f32.mrb[22].mxu0  ;;  %v1290_v36 = vpop.f32.mrb[22].mxu1  ;;  %v4413_v42 = vld [vmem:[%s3998_s7 + $0x24] ss:$16 sps:$4 sm:$0xff]   ;;  %v4416_v60 = vld [vmem:[%s3998_s7 + $0x2c] ss:$16 sps:$4 sm:$0xff]  }
 0x22a   : > { %v1297_v37 = vmul.f32 0.5, %v1293_v27  ;;  %v1250_v38 = vpop.f32.mrb[23].mxu0  ;;  %v1291_v14 = vpop.f32.mrb[23].mxu1  ;;  %v4403_v27 = vld [vmem:[%s3998_s7] ss:$16 sps:$4 sm:$0xff]  }
 0x22b   : > { %v1301_v47 = vmul.f32 0.5, %v1294_v34  ;;  %v1306_v48 = vmul.f32 0.5, %v1296_v33  ;;  %v4419_v34 = vld [vmem:[%s3998_s7 + $0x20] ss:$16 sps:$4 sm:$0xff]   ;;  %v4422_v33 = vld [vmem:[%s3998_s7 + $0x28] ss:$16 sps:$4 sm:$0xff]  }
 0x22c   : > { %3854 = vtanh.f32 %v1297_v37  ;;  %v4429_v35 = vld [vmem:[%s3998_s7 + $0x44] ss:$16 sps:$4 sm:$0xff]   ;;  %v4432_v36 = vld [vmem:[%s3998_s7 + $0x4c] ss:$16 sps:$4 sm:$0xff]   ;;  %v4435_v37 = vld [vmem:[%s3998_s7 + $0x40] ss:$16 sps:$4 sm:$0xff]  }
 0x22d   : > { %3856 = vtanh.f32 %v1301_v47  ;;  %v4438_v38 = vld [vmem:[%s3998_s7 + $0x48] ss:$16 sps:$4 sm:$0xff]   ;;  %v4445_v14 = vld [vmem:[%s3998_s7 + $0x64] ss:$16 sps:$4 sm:$0xff]   ;;  %v4448_v47 = vld [vmem:[%s3998_s7 + $0x6c] ss:$16 sps:$4 sm:$0xff]  }
 0x22e   : > { %3858 = vtanh.f32 %v1295_v31  ;;  %v4406_v31 = vld [vmem:[%s3998_s7 + $0x8] ss:$16 sps:$4 sm:$0xff]  }
 0x22f   : > { %3860 = vtanh.f32 %v1306_v48  ;;  %v4451_v48 = vld [vmem:[%s3998_s7 + $0x60] ss:$16 sps:$4 sm:$0xff]  }
 0x236   : > { %v3855_v39 = vpop.eup %3854 }
 0x237   : > { %v3857_v43 = vpop.eup %3856  ;;  %v1299_v40 = vmul.f32 0.5, %v3855_v39  ;;  %v4454_v39 = vld [vmem:[%s3998_s7 + $0x68] ss:$16 sps:$4 sm:$0xff]  }
 0x238   : > { %v1303_v45 = vmul.f32 0.5, %v3857_v43  ;;  %v3859_v44 = vpop.eup %3858  ;;  %v4461_v43 = vld [vmem:[%s3998_s7 + $0x84] ss:$16 sps:$4 sm:$0xff]  }
 0x239   : > { %v1300_v46 = vadd.f32 0.5, %v1299_v40  ;;  %v3861_v30 = vpop.eup %3860  ;;  %v4464_v40 = vld [vmem:[%s3998_s7 + $0x8c] ss:$16 sps:$4 sm:$0xff]  }
 0x23a   : > { %v1304_v49 = vadd.f32 0.5, %v1303_v45  ;;  %v1308_v4 = vmul.f32 0.5, %v3861_v30  ;;  %v4467_v45 = vld [vmem:[%s3998_s7 + $0x80] ss:$16 sps:$4 sm:$0xff]   ;;  %v4496_v30 = vld [vmem:[%s3998_s7 + $0xcc] ss:$16 sps:$4 sm:$0xff]  }
 0x23b   : > { %v1311_v26 = vmul.f32 %v3859_v44, %v1300_v46  ;;  %v4470_v46 = vld [vmem:[%s3998_s7 + $0x88] ss:$16 sps:$4 sm:$0xff]   ;;  %v4477_v44 = vld [vmem:[%s3998_s7 + $0xa4] ss:$16 sps:$4 sm:$0xff]  }
 0x23c   : > { %v1310_v56 = vmul.f32 %v1304_v49, %v4309_v15  ;;  %v1309_v41 = vadd.f32 0.5, %v1308_v4  ;;  %v4400_v15 = vld [vmem:[%s3998_s7 + $0xc] ss:$16 sps:$4 sm:$0xff]   ;;  %v4499_v4 = vld [vmem:[%s3998_s7 + $0xc0] ss:$16 sps:$4 sm:$0xff]  }
 0x23d   : > { %v4480_v49 = vld [vmem:[%s3998_s7 + $0xac] ss:$16 sps:$4 sm:$0xff]  }
 0x23e   : > { %v4351_v28 = vadd.f32 %v1311_v26, %v1310_v56  ;;  %v4483_v26 = vld [vmem:[%s3998_s7 + $0xa0] ss:$16 sps:$4 sm:$0xff]   ;;  %v4486_v56 = vld [vmem:[%s3998_s7 + $0xa8] ss:$16 sps:$4 sm:$0xff]  }
 0x240   : > { %3862 = vtanh.f32 %v4351_v28 }
 0x24a   : > { %v3863_v29 = vpop.eup %3862 }
 0x24b   : > { %v1314_v32 = vmul.f32 %v3863_v29, %v1309_v41  ;;  %v4502_v41 = vld [vmem:[%s3998_s7 + $0xc8] ss:$16 sps:$4 sm:$0xff]   ;;  %v4509_v29 = vld [vmem:[%s3998_s7 + $0xe4] ss:$16 sps:$4 sm:$0xff]  }
 0x24d   : > { %1316 = vst [vmem:[#allocation3 + $0x8] sm:$0xff] %v1314_v32  ;;  %v1324_v19 = vpack.c.bf16 %v1314_v32, %v1314_v32  ;;  %v4512_v32 = vld [vmem:[%s3998_s7 + $0xec] ss:$16 sps:$4 sm:$0xff]  }
 0x24f   : > { %1550 = vmatmul.mubr.bf16.vlgmr.msra.gmra.mrb[24].mxu0 %v1324_v19  ;;  %1591 = vmatmul.mubr.bf16.vlgmr.msra.gmra.mrb[24].mxu1 %v1324_v19  ;;  %v4515_v19 = vld [vmem:[%s3998_s7 + $0xe0] ss:$16 sps:$4 sm:$0xff]  }
 0x250   : > { %1824 = vmatpush1.bf16.msra.mxu0 %v4059_v50  ;;  %1865 = vmatpush1.bf16.msra.mxu1 %v4062_v51 }
 0x251   : > { %1825 = vmatprep.subr.bf16.mxu0 %v4067_v52  ;;  %1866 = vmatprep.subr.bf16.mxu1 %v4070_v53 }
 0x252   : > { %1855 = vmatprep.mubr.bf16.mxu0 %v4723_v57  ;;  %1896 = vmatprep.mubr.bf16.mxu1 %v4723_v57 }
 0x254   : > { %1826 = vmatpush1.bf16.msra.mxu0 %v4073_v54  ;;  %1867 = vmatpush1.bf16.msra.mxu1 %v4076_v55 }
 0x255   : > { %1827 = vmatprep.subr.bf16.mxu0 %v4083_v58  ;;  %1868 = vmatprep.subr.bf16.mxu1 %v4086_v59  ;;  %v4724_v59 = vld [vmem:[#allocation4_spill] sm:$0xff] }
 0x258   : > { %1828 = vmatpush1.bf16.msra.mxu0 %v4091_v61  ;;  %1869 = vmatpush1.bf16.msra.mxu1 %v4094_v62 }
 0x259   : > { %1829 = vmatprep.subr.bf16.mxu0 %v4099_v63  ;;  %1870 = vmatprep.subr.bf16.mxu1 %v4104_v0 }
 0x25c   : > { %1830 = vmatpush1.bf16.msra.mxu0 %v4107_v1  ;;  %1871 = vmatpush1.bf16.msra.mxu1 %v4110_v2 }
 0x25d   : > { %1831 = vmatprep.subr.bf16.mxu0 %v4117_v5  ;;  %1872 = vmatprep.subr.bf16.mxu1 %v4120_v6 }
 0x260   : > { %1832 = vmatpush1.bf16.msra.mxu0 %v4125_v7  ;;  %1873 = vmatpush1.bf16.msra.mxu1 %v4128_v8 }
 0x261   : > { %1833 = vmatprep.subr.bf16.mxu0 %v4131_v10  ;;  %1874 = vmatprep.subr.bf16.mxu1 %v4134_v11 }
 0x264   : > { %1834 = vmatpush1.bf16.msra.mxu0 %v4141_v12  ;;  %1875 = vmatpush1.bf16.msra.mxu1 %v4144_v13 }
 0x265   : > { %1835 = vmatprep.subr.bf16.mxu0 %v4147_v17  ;;  %1876 = vmatprep.subr.bf16.mxu1 %v4150_v18 }
 0x268   : > { %1836 = vmatpush1.bf16.msra.mxu0 %v4161_v20  ;;  %1877 = vmatpush1.bf16.msra.mxu1 %v4164_v21 }
 0x269   : > { %1837 = vmatprep.subr.bf16.mxu0 %v4169_v22  ;;  %1878 = vmatprep.subr.bf16.mxu1 %v4172_v23 }
 0x26c   : > { %1838 = vmatpush1.bf16.msra.mxu0 %v4177_v24  ;;  %1879 = vmatpush1.bf16.msra.mxu1 %v4180_v25 }
 0x26d   : > { %2170 = vmatprep.subr.bf16.mxu1 %v4400_v15 }
 0x322   : > { %v1551_v50 = vpop.f32.mrb[24].mxu0  ;;  %v1592_v51 = vpop.f32.mrb[24].mxu1 }
 0x323   : > { %v1599_v52 = vadd.f32 %v1551_v50, %v4245_v3  ;;  %v1601_v53 = vadd.f32 %v1592_v51, %v4248_v9  ;;  %v1553_v54 = vpop.f32.mrb[25].mxu0  ;;  %v1594_v55 = vpop.f32.mrb[25].mxu1  ;;  %v4518_v50 = vld [vmem:[%s3998_s7 + $0xe8] ss:$16 sps:$4 sm:$0xff]  }
 0x324   : > { %v1600_v58 = vadd.f32 %v1553_v54, %v4250_v16  ;;  %v1602_v61 = vadd.f32 %v1594_v55, %v4724_v59  ;;  %v1555_v62 = vpop.f32.mrb[26].mxu0  ;;  %v1596_v63 = vpop.f32.mrb[26].mxu1  ;;  %v4397_v16 = vld [vmem:[%s3998_s7 + $0x4] ss:$16 sps:$4 sm:$0xff]  }
 0x325   : > { %v1603_v0 = vmul.f32 0.5, %v1599_v52  ;;  %v1556_v1 = vpop.f32.mrb[27].mxu0  ;;  %v1597_v2 = vpop.f32.mrb[27].mxu1  ;;  %2129 = vmatprep.subr.bf16.mxu0 %v4397_v16  ;;  %v4726_v55 = vld [vmem:[#allocation6_spill] sm:$0xff]  ;;  %v4727_v62 = vld [vmem:[#allocation7_spill] sm:$0xff] }
 0x326   : > { %v1607_v5 = vmul.f32 0.5, %v1600_v58  ;;  %v1612_v6 = vmul.f32 0.5, %v1602_v61 }
 0x327   : > { %3864 = vtanh.f32 %v1603_v0  ;;  %v4728_v0 = vld [vmem:[#allocation8_spill] sm:$0xff] }
 0x328   : > { %3866 = vtanh.f32 %v1607_v5 }
 0x329   : > { %3868 = vtanh.f32 %v1601_v53  ;;  %v4725_v53 = vld [vmem:[#allocation5_spill] sm:$0xff] }
 0x32a   : > { %3870 = vtanh.f32 %v1612_v6 }
 0x331   : > { %v3865_v7 = vpop.eup %3864 }
 0x332   : > { %v3867_v8 = vpop.eup %3866  ;;  %v1605_v10 = vmul.f32 0.5, %v3865_v7 }
 0x333   : > { %v1609_v11 = vmul.f32 0.5, %v3867_v8  ;;  %v3869_v13 = vpop.eup %3868 }
 0x334   : > { %v1606_v12 = vadd.f32 0.5, %v1605_v10  ;;  %v3871_v22 = vpop.eup %3870 }
 0x335   : > { %v1610_v17 = vadd.f32 0.5, %v1609_v11  ;;  %v1614_v23 = vmul.f32 0.5, %v3871_v22 }
 0x336   : > { %v1617_v18 = vmul.f32 %v3869_v13, %v1606_v12 }
 0x337   : > { %v1616_v20 = vmul.f32 %v1610_v17, %v4351_v28  ;;  %v1615_v24 = vadd.f32 0.5, %v1614_v23  ;;  %v4493_v28 = vld [vmem:[%s3998_s7 + $0xc4] ss:$16 sps:$4 sm:$0xff]  }
 0x339   : > { %v4391_v21 = vadd.f32 %v1617_v18, %v1616_v20 }
 0x33b   : > { %3872 = vtanh.f32 %v4391_v21 }
 0x345   : > { %v3873_v25 = vpop.eup %3872 }
 0x346   : > { %v1620_v3 = vmul.f32 %v3873_v25, %v1615_v24 }
 0x348   : > { %1622 = vst [vmem:[#allocation3 + $0x10] sm:$0xff] %v1620_v3  ;;  %v1630_v9 = vpack.c.bf16 %v1620_v3, %v1620_v3 }
 0x34a   : > { %1856 = vmatmul.mubr.bf16.vlgmr.msra.gmra.mrb[28].mxu0 %v1630_v9  ;;  %1897 = vmatmul.mubr.bf16.vlgmr.msra.gmra.mrb[28].mxu1 %v1630_v9 }
 0x34b   : > { %2161 = vmatprep.mubr.bf16.mxu0 %v4723_v57  ;;  %2202 = vmatprep.mubr.bf16.mxu1 %v4723_v57 }
 0x34c   : > { %2130 = vmatpush1.bf16.msra.mxu0 %v4403_v27  ;;  %2171 = vmatpush1.bf16.msra.mxu1 %v4406_v31 }
 0x34d   : > { %2131 = vmatprep.subr.bf16.mxu0 %v4413_v42  ;;  %2172 = vmatprep.subr.bf16.mxu1 %v4416_v60 }
 0x350   : > { %2132 = vmatpush1.bf16.msra.mxu0 %v4419_v34  ;;  %2173 = vmatpush1.bf16.msra.mxu1 %v4422_v33 }
 0x351   : > { %2133 = vmatprep.subr.bf16.mxu0 %v4429_v35  ;;  %2174 = vmatprep.subr.bf16.mxu1 %v4432_v36 }
 0x354   : > { %2134 = vmatpush1.bf16.msra.mxu0 %v4435_v37  ;;  %2175 = vmatpush1.bf16.msra.mxu1 %v4438_v38 }
 0x355   : > { %2135 = vmatprep.subr.bf16.mxu0 %v4445_v14  ;;  %2176 = vmatprep.subr.bf16.mxu1 %v4448_v47 }
 0x358   : > { %2136 = vmatpush1.bf16.msra.mxu0 %v4451_v48  ;;  %2177 = vmatpush1.bf16.msra.mxu1 %v4454_v39 }
 0x359   : > { %2137 = vmatprep.subr.bf16.mxu0 %v4461_v43  ;;  %2178 = vmatprep.subr.bf16.mxu1 %v4464_v40 }
 0x35c   : > { %2138 = vmatpush1.bf16.msra.mxu0 %v4467_v45  ;;  %2179 = vmatpush1.bf16.msra.mxu1 %v4470_v46 }
 0x35d   : > { %2139 = vmatprep.subr.bf16.mxu0 %v4477_v44  ;;  %2180 = vmatprep.subr.bf16.mxu1 %v4480_v49 }
 0x360   : > { %2140 = vmatpush1.bf16.msra.mxu0 %v4483_v26  ;;  %2181 = vmatpush1.bf16.msra.mxu1 %v4486_v56 }
 0x361   : > { %2141 = vmatprep.subr.bf16.mxu0 %v4493_v28  ;;  %2182 = vmatprep.subr.bf16.mxu1 %v4496_v30 }
 0x364   : > { %2142 = vmatpush1.bf16.msra.mxu0 %v4499_v4  ;;  %2183 = vmatpush1.bf16.msra.mxu1 %v4502_v41 }
 0x365   : > { %2143 = vmatprep.subr.bf16.mxu0 %v4509_v29  ;;  %2184 = vmatprep.subr.bf16.mxu1 %v4512_v32 }
 0x368   : > { %2144 = vmatpush1.bf16.msra.mxu0 %v4515_v19  ;;  %2185 = vmatpush1.bf16.msra.mxu1 %v4518_v50 }
 0x369   : > { %2435 = vmatprep.subr.bf16.mxu0 %v4397_v16  ;;  %2476 = vmatprep.subr.bf16.mxu1 %v4400_v15 }
 0x41d   : > { %v1857_v51 = vpop.f32.mrb[28].mxu0  ;;  %v1898_v52 = vpop.f32.mrb[28].mxu1 }
 0x41e   : > { %v1905_v54 = vadd.f32 %v1857_v51, %v4725_v53  ;;  %v1907_v58 = vadd.f32 %v1898_v52, %v4726_v55  ;;  %v1859_v59 = vpop.f32.mrb[29].mxu0  ;;  %v1900_v61 = vpop.f32.mrb[29].mxu1 }
 0x41f   : > { %v1906_v63 = vadd.f32 %v1859_v59, %v4727_v62  ;;  %v1908_v1 = vadd.f32 %v1900_v61, %v4728_v0  ;;  %v1861_v2 = vpop.f32.mrb[30].mxu0  ;;  %v1902_v5 = vpop.f32.mrb[30].mxu1  ;;  %v4729_v59 = vld [vmem:[#allocation9_spill] sm:$0xff]  ;;  %v4730_v62 = vld [vmem:[#allocation10_spill] sm:$0xff] }
 0x420   : > { %v1909_v6 = vmul.f32 0.5, %v1905_v54  ;;  %v1862_v7 = vpop.f32.mrb[31].mxu0  ;;  %v1903_v8 = vpop.f32.mrb[31].mxu1  ;;  %v4731_v2 = vld [vmem:[#allocation11_spill] sm:$0xff] }
 0x421   : > { %v1913_v10 = vmul.f32 0.5, %v1906_v63  ;;  %v1918_v11 = vmul.f32 0.5, %v1908_v1 }
 0x422   : > { %3874 = vtanh.f32 %v1909_v6  ;;  %v4732_v6 = vld [vmem:[#allocation12_spill] sm:$0xff] }
 0x423   : > { %3876 = vtanh.f32 %v1913_v10 }
 0x424   : > { %3878 = vtanh.f32 %v1907_v58 }
 0x425   : > { %3880 = vtanh.f32 %v1918_v11 }
 0x42c   : > { %v3875_v12 = vpop.eup %3874 }
 0x42d   : > { %v3877_v13 = vpop.eup %3876  ;;  %v1911_v17 = vmul.f32 0.5, %v3875_v12 }
 0x42e   : > { %v1915_v18 = vmul.f32 0.5, %v3877_v13  ;;  %v3879_v22 = vpop.eup %3878 }
 0x42f   : > { %v1912_v20 = vadd.f32 0.5, %v1911_v17  ;;  %v3881_v9 = vpop.eup %3880 }
 0x430   : > { %v1916_v23 = vadd.f32 0.5, %v1915_v18  ;;  %v1920_v51 = vmul.f32 0.5, %v3881_v9 }
 0x431   : > { %v1923_v24 = vmul.f32 %v3879_v22, %v1912_v20 }
 0x432   : > { %v1922_v25 = vmul.f32 %v1916_v23, %v4391_v21  ;;  %v1921_v52 = vadd.f32 0.5, %v1920_v51 }
 0x434   : > { %v4531_v3 = vadd.f32 %v1923_v24, %v1922_v25 }
 0x436   : > { %3882 = vtanh.f32 %v4531_v3 }
 0x440   : > { %v3883_v53 = vpop.eup %3882 }
 0x441   : > { %v1926_v54 = vmul.f32 %v3883_v53, %v1921_v52 }
 0x443   : > { %1928 = vst [vmem:[#allocation3 + $0x18] sm:$0xff] %v1926_v54  ;;  %v1936_v55 = vpack.c.bf16 %v1926_v54, %v1926_v54 }
 0x445   : > { %2162 = vmatmul.mubr.bf16.vlgmr.msra.gmra.mrb[32].mxu0 %v1936_v55  ;;  %2203 = vmatmul.mubr.bf16.vlgmr.msra.gmra.mrb[32].mxu1 %v1936_v55 }
 0x446   : > { %2436 = vmatpush1.bf16.msra.mxu0 %v4403_v27  ;;  %2477 = vmatpush1.bf16.msra.mxu1 %v4406_v31 }
 0x447   : > { %2437 = vmatprep.subr.bf16.mxu0 %v4413_v42  ;;  %2478 = vmatprep.subr.bf16.mxu1 %v4416_v60 }
 0x448   : > { %2467 = vmatprep.mubr.bf16.mxu0 %v4723_v57  ;;  %2508 = vmatprep.mubr.bf16.mxu1 %v4723_v57 }
 0x44a   : > { %2438 = vmatpush1.bf16.msra.mxu0 %v4419_v34  ;;  %2479 = vmatpush1.bf16.msra.mxu1 %v4422_v33 }
 0x44b   : > { %2439 = vmatprep.subr.bf16.mxu0 %v4429_v35  ;;  %2480 = vmatprep.subr.bf16.mxu1 %v4432_v36 }
 0x44e   : > { %2440 = vmatpush1.bf16.msra.mxu0 %v4435_v37  ;;  %2481 = vmatpush1.bf16.msra.mxu1 %v4438_v38 }
 0x44f   : > { %2441 = vmatprep.subr.bf16.mxu0 %v4445_v14  ;;  %2482 = vmatprep.subr.bf16.mxu1 %v4448_v47 }
 0x452   : > { %2442 = vmatpush1.bf16.msra.mxu0 %v4451_v48  ;;  %2483 = vmatpush1.bf16.msra.mxu1 %v4454_v39 }
 0x453   : > { %2443 = vmatprep.subr.bf16.mxu0 %v4461_v43  ;;  %2484 = vmatprep.subr.bf16.mxu1 %v4464_v40 }
 0x456   : > { %2444 = vmatpush1.bf16.msra.mxu0 %v4467_v45  ;;  %2485 = vmatpush1.bf16.msra.mxu1 %v4470_v46 }
 0x457   : > { %2445 = vmatprep.subr.bf16.mxu0 %v4477_v44  ;;  %2486 = vmatprep.subr.bf16.mxu1 %v4480_v49 }
 0x45a   : > { %2446 = vmatpush1.bf16.msra.mxu0 %v4483_v26  ;;  %2487 = vmatpush1.bf16.msra.mxu1 %v4486_v56 }
 0x45b   : > { %2447 = vmatprep.subr.bf16.mxu0 %v4493_v28  ;;  %2488 = vmatprep.subr.bf16.mxu1 %v4496_v30 }
 0x45e   : > { %2448 = vmatpush1.bf16.msra.mxu0 %v4499_v4  ;;  %2489 = vmatpush1.bf16.msra.mxu1 %v4502_v41 }
 0x45f   : > { %2449 = vmatprep.subr.bf16.mxu0 %v4509_v29  ;;  %2490 = vmatprep.subr.bf16.mxu1 %v4512_v32 }
 0x462   : > { %2450 = vmatpush1.bf16.msra.mxu0 %v4515_v19  ;;  %2491 = vmatpush1.bf16.msra.mxu1 %v4518_v50 }
 0x463   : > { %2741 = vmatprep.subr.bf16.mxu0 %v4397_v16  ;;  %2782 = vmatprep.subr.bf16.mxu1 %v4400_v15 }
 0x518   : > { %v2163_v21 = vpop.f32.mrb[32].mxu0  ;;  %v2204_v58 = vpop.f32.mrb[32].mxu1 }
 0x519   : > { %v2211_v61 = vadd.f32 %v2163_v21, %v4729_v59  ;;  %v2213_v63 = vadd.f32 %v2204_v58, %v4730_v62  ;;  %v2165_v0 = vpop.f32.mrb[33].mxu0  ;;  %v2206_v1 = vpop.f32.mrb[33].mxu1 }
 0x51a   : > { %v2212_v5 = vadd.f32 %v2165_v0, %v4731_v2  ;;  %v2214_v7 = vadd.f32 %v2206_v1, %v4732_v6  ;;  %v2167_v8 = vpop.f32.mrb[34].mxu0  ;;  %v2208_v10 = vpop.f32.mrb[34].mxu1  ;;  %v4733_v0 = vld [vmem:[#allocation13_spill] sm:$0xff]  ;;  %v4734_v2 = vld [vmem:[#allocation14_spill] sm:$0xff] }
 0x51b   : > { %v2215_v11 = vmul.f32 0.5, %v2211_v61  ;;  %v2168_v12 = vpop.f32.mrb[35].mxu0  ;;  %v2209_v13 = vpop.f32.mrb[35].mxu1  ;;  %v4735_v8 = vld [vmem:[#allocation15_spill] sm:$0xff] }
 0x51c   : > { %v2219_v17 = vmul.f32 0.5, %v2212_v5  ;;  %v2224_v18 = vmul.f32 0.5, %v2214_v7 }
 0x51d   : > { %3884 = vtanh.f32 %v2215_v11  ;;  %v4736_v11 = vld [vmem:[#allocation16_spill] sm:$0xff] }
 0x51e   : > { %3886 = vtanh.f32 %v2219_v17 }
 0x51f   : > { %3888 = vtanh.f32 %v2213_v63 }
 0x520   : > { %3890 = vtanh.f32 %v2224_v18 }
 0x527   : > { %v3885_v20 = vpop.eup %3884 }
 0x528   : > { %v3887_v22 = vpop.eup %3886  ;;  %v2217_v23 = vmul.f32 0.5, %v3885_v20 }
 0x529   : > { %v2221_v24 = vmul.f32 0.5, %v3887_v22  ;;  %v3889_v9 = vpop.eup %3888 }
 0x52a   : > { %v2218_v25 = vadd.f32 0.5, %v2217_v23  ;;  %v3891_v55 = vpop.eup %3890 }
 0x52b   : > { %v2222_v51 = vadd.f32 0.5, %v2221_v24  ;;  %v2226_v21 = vmul.f32 0.5, %v3891_v55 }
 0x52c   : > { %v2229_v52 = vmul.f32 %v3889_v9, %v2218_v25 }
 0x52d   : > { %v2228_v53 = vmul.f32 %v2222_v51, %v4531_v3  ;;  %v2227_v58 = vadd.f32 0.5, %v2226_v21 }
 0x52f   : > { %v4573_v54 = vadd.f32 %v2229_v52, %v2228_v53 }
 0x531   : > { %3892 = vtanh.f32 %v4573_v54 }
 0x53b   : > { %v3893_v59 = vpop.eup %3892 }
 0x53c   : > { %v2232_v61 = vmul.f32 %v3893_v59, %v2227_v58 }
 0x53e   : > { %2234 = vst [vmem:[#allocation3 + $0x20] sm:$0xff] %v2232_v61  ;;  %v2242_v62 = vpack.c.bf16 %v2232_v61, %v2232_v61 }
 0x540   : > { %2468 = vmatmul.mubr.bf16.vlgmr.msra.gmra.mrb[36].mxu0 %v2242_v62  ;;  %2509 = vmatmul.mubr.bf16.vlgmr.msra.gmra.mrb[36].mxu1 %v2242_v62 }
 0x541   : > { %2742 = vmatpush1.bf16.msra.mxu0 %v4403_v27  ;;  %2783 = vmatpush1.bf16.msra.mxu1 %v4406_v31 }
 0x542   : > { %2743 = vmatprep.subr.bf16.mxu0 %v4413_v42  ;;  %2784 = vmatprep.subr.bf16.mxu1 %v4416_v60 }
 0x543   : > { %2773 = vmatprep.mubr.bf16.mxu0 %v4723_v57  ;;  %2814 = vmatprep.mubr.bf16.mxu1 %v4723_v57 }
 0x545   : > { %2744 = vmatpush1.bf16.msra.mxu0 %v4419_v34  ;;  %2785 = vmatpush1.bf16.msra.mxu1 %v4422_v33 }
 0x546   : > { %2745 = vmatprep.subr.bf16.mxu0 %v4429_v35  ;;  %2786 = vmatprep.subr.bf16.mxu1 %v4432_v36 }
 0x549   : > { %2746 = vmatpush1.bf16.msra.mxu0 %v4435_v37  ;;  %2787 = vmatpush1.bf16.msra.mxu1 %v4438_v38 }
 0x54a   : > { %2747 = vmatprep.subr.bf16.mxu0 %v4445_v14  ;;  %2788 = vmatprep.subr.bf16.mxu1 %v4448_v47 }
 0x54d   : > { %2748 = vmatpush1.bf16.msra.mxu0 %v4451_v48  ;;  %2789 = vmatpush1.bf16.msra.mxu1 %v4454_v39 }
 0x54e   : > { %2749 = vmatprep.subr.bf16.mxu0 %v4461_v43  ;;  %2790 = vmatprep.subr.bf16.mxu1 %v4464_v40 }
 0x551   : > { %2750 = vmatpush1.bf16.msra.mxu0 %v4467_v45  ;;  %2791 = vmatpush1.bf16.msra.mxu1 %v4470_v46 }
 0x552   : > { %2751 = vmatprep.subr.bf16.mxu0 %v4477_v44  ;;  %2792 = vmatprep.subr.bf16.mxu1 %v4480_v49 }
 0x555   : > { %2752 = vmatpush1.bf16.msra.mxu0 %v4483_v26  ;;  %2793 = vmatpush1.bf16.msra.mxu1 %v4486_v56 }
 0x556   : > { %2753 = vmatprep.subr.bf16.mxu0 %v4493_v28  ;;  %2794 = vmatprep.subr.bf16.mxu1 %v4496_v30 }
 0x559   : > { %2754 = vmatpush1.bf16.msra.mxu0 %v4499_v4  ;;  %2795 = vmatpush1.bf16.msra.mxu1 %v4502_v41 }
 0x55a   : > { %2755 = vmatprep.subr.bf16.mxu0 %v4509_v29  ;;  %2796 = vmatprep.subr.bf16.mxu1 %v4512_v32 }
 0x55d   : > { %2756 = vmatpush1.bf16.msra.mxu0 %v4515_v19  ;;  %2797 = vmatpush1.bf16.msra.mxu1 %v4518_v50 }
 0x55e   : > { %3047 = vmatprep.subr.bf16.mxu0 %v4397_v16  ;;  %3088 = vmatprep.subr.bf16.mxu1 %v4400_v15 }
 0x613   : > { %v2469_v3 = vpop.f32.mrb[36].mxu0  ;;  %v2510_v63 = vpop.f32.mrb[36].mxu1 }
 0x614   : > { %v2517_v1 = vadd.f32 %v2469_v3, %v4733_v0  ;;  %v2519_v5 = vadd.f32 %v2510_v63, %v4734_v2  ;;  %v2471_v6 = vpop.f32.mrb[37].mxu0  ;;  %v2512_v7 = vpop.f32.mrb[37].mxu1 }
 0x615   : > { %v2518_v10 = vadd.f32 %v2471_v6, %v4735_v8  ;;  %v2520_v12 = vadd.f32 %v2512_v7, %v4736_v11  ;;  %v2473_v13 = vpop.f32.mrb[38].mxu0  ;;  %v2514_v17 = vpop.f32.mrb[38].mxu1  ;;  %v4741_v8 = vld [vmem:[#allocation21_spill] sm:$0xff]  ;;  %v4742_v11 = vld [vmem:[#allocation22_spill] sm:$0xff] }
 0x616   : > { %v2521_v18 = vmul.f32 0.5, %v2517_v1  ;;  %v2474_v20 = vpop.f32.mrb[39].mxu0  ;;  %v2515_v22 = vpop.f32.mrb[39].mxu1 }
 0x617   : > { %v2525_v16 = vmul.f32 0.5, %v2518_v10  ;;  %v2530_v15 = vmul.f32 0.5, %v2520_v12  ;;  %v4744_v22 = vld [vmem:[#allocation24_spill] sm:$0xff] }
 0x618   : > { %3894 = vtanh.f32 %v2521_v18  ;;  %v4743_v18 = vld [vmem:[#allocation23_spill] sm:$0xff] }
 0x619   : > { %3896 = vtanh.f32 %v2525_v16 }
 0x61a   : > { %3898 = vtanh.f32 %v2519_v5 }
 0x61b   : > { %3900 = vtanh.f32 %v2530_v15 }
 0x622   : > { %v3895_v23 = vpop.eup %3894 }
 0x623   : > { %v3897_v24 = vpop.eup %3896  ;;  %v2523_v25 = vmul.f32 0.5, %v3895_v23 }
 0x624   : > { %v2527_v9 = vmul.f32 0.5, %v3897_v24  ;;  %v3899_v52 = vpop.eup %3898 }
 0x625   : > { %v2524_v51 = vadd.f32 0.5, %v2523_v25  ;;  %v3901_v59 = vpop.eup %3900 }
 0x626   : > { %v2528_v53 = vadd.f32 0.5, %v2527_v9  ;;  %v2532_v61 = vmul.f32 0.5, %v3901_v59 }
 0x627   : > { %v2535_v55 = vmul.f32 %v3899_v52, %v2524_v51 }
 0x628   : > { %v2534_v21 = vmul.f32 %v2528_v53, %v4573_v54  ;;  %v2533_v62 = vadd.f32 0.5, %v2532_v61 }
 0x62a   : > { %v4615_v58 = vadd.f32 %v2535_v55, %v2534_v21 }
 0x62c   : > { %3902 = vtanh.f32 %v4615_v58 }
 0x636   : > { %v3903_v3 = vpop.eup %3902 }
 0x637   : > { %v2538_v63 = vmul.f32 %v3903_v3, %v2533_v62 }
 0x639   : > { %2540 = vst [vmem:[#allocation3 + $0x28] sm:$0xff] %v2538_v63  ;;  %v2548_v0 = vpack.c.bf16 %v2538_v63, %v2538_v63 }
 0x63b   : > { %2774 = vmatmul.mubr.bf16.vlgmr.msra.gmra.mrb[40].mxu0 %v2548_v0  ;;  %2815 = vmatmul.mubr.bf16.vlgmr.msra.gmra.mrb[40].mxu1 %v2548_v0 }
 0x63c   : > { %3048 = vmatpush1.bf16.msra.mxu0 %v4403_v27  ;;  %3089 = vmatpush1.bf16.msra.mxu1 %v4406_v31  ;;  %v4737_v31 = vld [vmem:[#allocation17_spill] sm:$0xff] }
 0x63d   : > { %3049 = vmatprep.subr.bf16.mxu0 %v4413_v42  ;;  %3090 = vmatprep.subr.bf16.mxu1 %v4416_v60  ;;  %v4738_v60 = vld [vmem:[#allocation18_spill] sm:$0xff] }
 0x63e   : > { %3079 = vmatprep.mubr.bf16.mxu0 %v4723_v57  ;;  %3120 = vmatprep.mubr.bf16.mxu1 %v4723_v57 }
 0x640   : > { %3050 = vmatpush1.bf16.msra.mxu0 %v4419_v34  ;;  %3091 = vmatpush1.bf16.msra.mxu1 %v4422_v33 }
 0x641   : > { %3051 = vmatprep.subr.bf16.mxu0 %v4429_v35  ;;  %3092 = vmatprep.subr.bf16.mxu1 %v4432_v36  ;;  %v4739_v36 = vld [vmem:[#allocation19_spill] sm:$0xff] }
 0x644   : > { %3052 = vmatpush1.bf16.msra.mxu0 %v4435_v37  ;;  %3093 = vmatpush1.bf16.msra.mxu1 %v4438_v38  ;;  %v4740_v38 = vld [vmem:[#allocation20_spill] sm:$0xff] }
 0x645   : > { %3053 = vmatprep.subr.bf16.mxu0 %v4445_v14  ;;  %3094 = vmatprep.subr.bf16.mxu1 %v4448_v47 }
 0x648   : > { %3054 = vmatpush1.bf16.msra.mxu0 %v4451_v48  ;;  %3095 = vmatpush1.bf16.msra.mxu1 %v4454_v39 }
 0x649   : > { %3055 = vmatprep.subr.bf16.mxu0 %v4461_v43  ;;  %3096 = vmatprep.subr.bf16.mxu1 %v4464_v40 }
 0x64c   : > { %3056 = vmatpush1.bf16.msra.mxu0 %v4467_v45  ;;  %3097 = vmatpush1.bf16.msra.mxu1 %v4470_v46 }
 0x64d   : > { %3057 = vmatprep.subr.bf16.mxu0 %v4477_v44  ;;  %3098 = vmatprep.subr.bf16.mxu1 %v4480_v49 }
 0x650   : > { %3058 = vmatpush1.bf16.msra.mxu0 %v4483_v26  ;;  %3099 = vmatpush1.bf16.msra.mxu1 %v4486_v56 }
 0x651   : > { %3059 = vmatprep.subr.bf16.mxu0 %v4493_v28  ;;  %3100 = vmatprep.subr.bf16.mxu1 %v4496_v30 }
 0x654   : > { %3060 = vmatpush1.bf16.msra.mxu0 %v4499_v4  ;;  %3101 = vmatpush1.bf16.msra.mxu1 %v4502_v41 }
 0x655   : > { %3061 = vmatprep.subr.bf16.mxu0 %v4509_v29  ;;  %3102 = vmatprep.subr.bf16.mxu1 %v4512_v32 }
 0x658   : > { %3062 = vmatpush1.bf16.msra.mxu0 %v4515_v19  ;;  %3103 = vmatpush1.bf16.msra.mxu1 %v4518_v50 }
 0x70e   : > { %v2775_v57 = vpop.f32.mrb[40].mxu0  ;;  %v2816_v27 = vpop.f32.mrb[40].mxu1 }
 0x70f   : > { %v2823_v42 = vadd.f32 %v2775_v57, %v4737_v31  ;;  %v2825_v34 = vadd.f32 %v2816_v27, %v4738_v60  ;;  %v2777_v33 = vpop.f32.mrb[41].mxu0  ;;  %v2818_v35 = vpop.f32.mrb[41].mxu1 }
 0x710   : > { %v2824_v37 = vadd.f32 %v2777_v33, %v4739_v36  ;;  %v2826_v14 = vadd.f32 %v2818_v35, %v4740_v38  ;;  %v2779_v47 = vpop.f32.mrb[42].mxu0  ;;  %v2820_v48 = vpop.f32.mrb[42].mxu1  ;;  %v3941_v33 = vmov (!%p3627_p5), 0.0   ;;  %v3925_v35 = vld [vmem:[%s4697_s4 + $0x8] sm:$0xff] (!%p3627_p5)   ;;  %v3926_v36 = vld [vmem:[%s4697_s4 + $0x10] sm:$0xff] (!%p3627_p5)   ;;  %v3928_v38 = vld [vmem:[%s4697_s4 + $0x20] sm:$0xff] (!%p3627_p5)  }
 0x711   : > { %v2827_v39 = vmul.f32 0.5, %v2823_v42  ;;  %v2780_v43 = vpop.f32.mrb[43].mxu0  ;;  %v2821_v40 = vpop.f32.mrb[43].mxu1  ;;  %3669 = vmatprep.subr.bf16.mxu0 (!%p3627_p5), %v3941_v33  ;;  %v3930_v47 = vld [vmem:[%s4697_s4 + $0x30] sm:$0xff] (!%p3627_p5)   ;;  %v3931_v48 = vld [vmem:[%s4697_s4 + $0x38] sm:$0xff] (!%p3627_p5)  }
 0x712   : > { %v2831_v45 = vmul.f32 0.5, %v2824_v37  ;;  %v2836_v46 = vmul.f32 0.5, %v2826_v14  ;;  %v3927_v37 = vld [vmem:[%s4697_s4 + $0x18] sm:$0xff] (!%p3627_p5)   ;;  %v3929_v14 = vld [vmem:[%s4697_s4 + $0x28] sm:$0xff] (!%p3627_p5)   ;;  %v3628_v43 = vld [vmem:[%s4698_s5] ss:$0 sm:$0xff] (!%p3627_p5) }
 0x713   : > { %3904 = vtanh.f32 %v2827_v39 }
 0x714   : > { %3906 = vtanh.f32 %v2831_v45 }
 0x715   : > { %3908 = vtanh.f32 %v2825_v34  ;;  %v3924_v34 = vld [vmem:[%s4697_s4] sm:$0xff] (!%p3627_p5)  }
 0x716   : > { %3910 = vtanh.f32 %v2836_v46 }
 0x71d   : > { %v3905_v44 = vpop.eup %3904 }
 0x71e   : > { %v3907_v49 = vpop.eup %3906  ;;  %v2829_v26 = vmul.f32 0.5, %v3905_v44 }
 0x71f   : > { %v2833_v56 = vmul.f32 0.5, %v3907_v49  ;;  %v3909_v30 = vpop.eup %3908 }
 0x720   : > { %v2830_v28 = vadd.f32 0.5, %v2829_v26  ;;  %v3911_v19 = vpop.eup %3910 }
 0x721   : > { %v2834_v4 = vadd.f32 0.5, %v2833_v56  ;;  %v2838_v50 = vmul.f32 0.5, %v3911_v19 }
 0x722   : > { %v2841_v41 = vmul.f32 %v3909_v30, %v2830_v28 }
 0x723   : > { %v2840_v29 = vmul.f32 %v2834_v4, %v4615_v58  ;;  %v2839_v54 = vadd.f32 0.5, %v2838_v50 }
 0x725   : > { %v2842_v32 = vadd.f32 %v2841_v41, %v2840_v29 }
 0x727   : > { %3912 = vtanh.f32 %v2842_v32 }
 0x731   : > { %v3913_v1 = vpop.eup %3912 }
 0x732   : > { %v2844_v2 = vmul.f32 %v3913_v1, %v2839_v54 }
 0x734   : > { %2846 = vst [vmem:[#allocation3 + $0x30] sm:$0xff] %v2844_v2  ;;  %v2854_v5 = vpack.c.bf16 %v2844_v2, %v2844_v2 }
 0x736   : > { %3080 = vmatmul.mubr.bf16.vlgmr.msra.gmra.mrb[44].mxu0 %v2854_v5  ;;  %3121 = vmatmul.mubr.bf16.vlgmr.msra.gmra.mrb[44].mxu1 %v2854_v5 }
 0x737   : > { %3670 = vmatpush3.bf16.msra.mxu0 (!%p3627_p5), %v3924_v34  ;;  %3685 = vmatprep.mubr.msk.bf16.mxu0 (!%p3627_p5), %vm3942_vm0, %v3941_v33 }
 0x738   : > { %3671 = vmatprep.subr.bf16.mxu0 (!%p3627_p5), %v3941_v33 }
 0x73b   : > { %3672 = vmatpush3.bf16.msra.mxu0 (!%p3627_p5), %v3925_v35 }
 0x73c   : > { %3673 = vmatprep.subr.bf16.mxu0 (!%p3627_p5), %v3941_v33 }
 0x73f   : > { %3674 = vmatpush3.bf16.msra.mxu0 (!%p3627_p5), %v3926_v36 }
 0x740   : > { %3675 = vmatprep.subr.bf16.mxu0 (!%p3627_p5), %v3941_v33 }
 0x743   : > { %3676 = vmatpush3.bf16.msra.mxu0 (!%p3627_p5), %v3927_v37 }
 0x744   : > { %3677 = vmatprep.subr.bf16.mxu0 (!%p3627_p5), %v3941_v33 }
 0x747   : > { %3678 = vmatpush3.bf16.msra.mxu0 (!%p3627_p5), %v3928_v38 }
 0x748   : > { %3679 = vmatprep.subr.bf16.mxu0 (!%p3627_p5), %v3941_v33 }
 0x74b   : > { %3680 = vmatpush3.bf16.msra.mxu0 (!%p3627_p5), %v3929_v14 }
 0x74c   : > { %3681 = vmatprep.subr.bf16.mxu0 (!%p3627_p5), %v3941_v33 }
 0x74f   : > { %3682 = vmatpush3.bf16.msra.mxu0 (!%p3627_p5), %v3930_v47 }
 0x750   : > { %3683 = vmatprep.subr.bf16.mxu0 (!%p3627_p5), %v3941_v33 }
 0x753   : > { %3684 = vmatpush3.bf16.msra.mxu0 (!%p3627_p5), %v3931_v48 }
 0x809   : > { %v3081_v6 = vpop.f32.mrb[44].mxu0  ;;  %v3122_v7 = vpop.f32.mrb[44].mxu1 }
 0x80a   : > { %v3129_v10 = vadd.f32 %v3081_v6, %v4741_v8  ;;  %v3131_v12 = vadd.f32 %v3122_v7, %v4742_v11  ;;  %v3083_v13 = vpop.f32.mrb[45].mxu0  ;;  %v3124_v17 = vpop.f32.mrb[45].mxu1 }
 0x80b   : > { %v3130_v20 = vadd.f32 %v3083_v13, %v4743_v18  ;;  %v3132_v16 = vadd.f32 %v3124_v17, %v4744_v22  ;;  %v3085_v15 = vpop.f32.mrb[46].mxu0  ;;  %v3126_v23 = vpop.f32.mrb[46].mxu1 }
 0x80c   : > { %v3133_v24 = vmul.f32 0.5, %v3129_v10  ;;  %v3086_v25 = vpop.f32.mrb[47].mxu0  ;;  %v3127_v9 = vpop.f32.mrb[47].mxu1 }
 0x80d   : > { %v3137_v51 = vmul.f32 0.5, %v3130_v20  ;;  %v3142_v52 = vmul.f32 0.5, %v3132_v16 }
 0x80e   : > { %3914 = vtanh.f32 %v3133_v24 }
 0x80f   : > { %3916 = vtanh.f32 %v3137_v51 }
 0x810   : > { %3918 = vtanh.f32 %v3131_v12 }
 0x811   : > { %3920 = vtanh.f32 %v3142_v52 }
 0x818   : > { %v3915_v53 = vpop.eup %3914 }
 0x819   : > { %v3917_v55 = vpop.eup %3916  ;;  %v3135_v21 = vmul.f32 0.5, %v3915_v53 }
 0x81a   : > { %v3139_v58 = vmul.f32 0.5, %v3917_v55  ;;  %v3919_v61 = vpop.eup %3918 }
 0x81b   : > { %v3136_v59 = vadd.f32 0.5, %v3135_v21  ;;  %v3921_v57 = vpop.eup %3920 }
 0x81c   : > { %v3140_v62 = vadd.f32 0.5, %v3139_v58  ;;  %v3144_v27 = vmul.f32 0.5, %v3921_v57 }
 0x81d   : > { %v3147_v3 = vmul.f32 %v3919_v61, %v3136_v59 }
 0x81e   : > { %v3146_v63 = vmul.f32 %v3140_v62, %v2842_v32  ;;  %v3145_v31 = vadd.f32 0.5, %v3144_v27 }
 0x820   : > { %v3148_v0 = vadd.f32 %v3147_v3, %v3146_v63 }
 0x822   : > { %3922 = vtanh.f32 %v3148_v0 }
 0x829   : > { %3156 = sbr.rel (%p3627_p5) target bundleno = 2312 (0x908), region = 52 }
 0x82c   : > { %v3923_v42 = vpop.eup %3922 }
 0x82d   : > { %v3150_v60 = vmul.f32 %v3923_v42, %v3145_v31 }
 0x82f   : > { %3152 = vst [vmem:[#allocation3 + $0x38] sm:$0xff] %v3150_v60  ;;  %v3157_v39 = vpack.c.bf16 (!%p3627_p5), %v3150_v60, %v3150_v60 }
 0x831   : > { %3686 = vmatmul.mubr.bf16.vlgmr.msra.gmra.mrb[0].mxu0 %v3157_v39 }
 0x904   : > { %v3263_v40 = vpop.f32.mrb[0].mxu0 }
 0x905   : > { %v3264_v45 = vadd.f32 %v3628_v43, %v3263_v40  ;;  %v3687_v46 = vpop.f32.mrb[1].mxu0 }
 0x906   : > { %v3266_v44 = vpop.f32.mrb[2].mxu0 }
 0x907   : > { %3269 = vst [vmem:[%s4699_s6] sm:$0xff] %v3264_v45  ;;  %v3688_v49 = vpop.f32.mrb[3].mxu0 }
 0x908 PF: > { %s16_s21 = sadd.s32 1, %s3938_s21  }
 0x909   : > { %p13_p6 = scmp.ge.s32.totalorder %s16_s21, 4  }
 0x90b   :  { %15 = sbr.rel (!%p13_p6) target bundleno = 1 (0x1), region = 99 }

</bundles_post_ra>
